<compile_context>
chip_gen: v5e
topology: v5e:2x2
jax: 0.10.0
libtpu: 0.0.40
codegen_flags: <defaults>
</compile_context>

<pallas_src>
import functools

import jax
import jax.numpy as jnp
import numpy as np
from jax.experimental import pallas as pl
from jax.experimental.pallas import tpu as pltpu


def _round_up(x: int, m: int) -> int:
    return ((x + m - 1) // m) * m


def _cat_classifier_kernel(idx_ref, len_ref,            # scalar prefetch (SMEM)
                           emb_hbm, wt_ref, b_ref,      # inputs
                           out_ref,                     # output
                           mean_ref, row_buf, sem,      # scratch
                           *, tb: int, L: int, nbuf: int, apply_sigmoid: bool):
    """One grid step handles `tb` bags: pipelined DMA gather, masked mean, fc, store."""
    bt = pl.program_id(0)
    tile_base = bt * tb

    def read_bag_ids(row):
        base = row * L
        return [idx_ref[base + t] for t in range(L)]    # SMEM scalar reads (flat 1-D layout)

    def start_bag_fetch(slot, ids):
        # L independent row gathers into one slot, all signaling the same DMA semaphore.
        for t, tok in enumerate(ids):
            pltpu.make_async_copy(emb_hbm.at[pl.ds(tok, 1)],        # [1, D_pad] HBM row
                                  row_buf.at[slot, pl.ds(t, 1)],
                                  sem.at[slot]).start()

    # ---- prologue: prime the first `nbuf` bags of this tile (nbuf*L DMAs in flight) ----
    for s in range(nbuf):
        start_bag_fetch(s, read_bag_ids(tile_base + s))

    row_iota = jax.lax.broadcasted_iota(jnp.int32, (L, 1), 0)       # hoisted out of the loop

    @pl.loop(0, tb)
    def _(j):
        slot = j & (nbuf - 1)                 # nbuf is a power of two
        row = tile_base + j

        # SMEM reads hoisted above the DMA wait (.wait() breaks sst->sld forwarding).
        n = jnp.minimum(len_ref[row], L)                            # clamped bag length
        next_ids = read_bag_ids(row + nbuf)                         # ids padded by nbuf bags

        # One wait covering this bag's L row-copies (the semaphore accumulates their bytes).
        pltpu.make_async_copy(emb_hbm.at[pl.ds(0, L)], row_buf.at[slot],
                              sem.at[slot]).wait()
        chunk = row_buf[slot].astype(jnp.float32)                   # (L, D_pad), f32 accumulate

        # Refill the drained slot with bag j+nbuf while we reduce this one.
        @pl.when(j + nbuf < tb)
        def _():
            start_bag_fetch(slot, next_ids)

        # Masked mean over the valid rows: one chunked reduce instead of L (1,D) VALU adds.
        inv = 1.0 / jnp.maximum(n, 1).astype(jnp.float32)           # exact divide (tiny)
        bag_mean = jnp.sum(jnp.where(row_iota < n, chunk, 0.0),
                           axis=0, keepdims=True) * inv             # (1, D_pad)
        mean_ref[pl.ds(j, 1), :] = bag_mean

    # ---- fc for the whole tile: lane-dense (TB, C_pad) MXU matmul + bias ----
    # TODO(synk): the fc matmul is not overlapped with the next tile's gather.
    y = jnp.dot(mean_ref[...].astype(wt_ref.dtype), wt_ref[...],
                preferred_element_type=jnp.float32) + b_ref[...]
    if apply_sigmoid:
        y = jax.nn.sigmoid(y)
    out_ref[...] = y.astype(out_ref.dtype)                          # unmasked lane-dense store


def category_classifier_forward(x_in, offsets, emb_w, fc_w, fc_b, *,
                                max_len=None, apply_sigmoid: bool = False,
                                bags_per_tile: int = 128, fetch_depth: int = 4):
    """Pallas forward pass matching CategoryClassifier.forward (EmbeddingBag mean + Linear)."""
    n_tokens = int(x_in.shape[0])
    B = int(offsets.shape[0])
    V, D = emb_w.shape
    C = fc_w.shape[0]

    offsets = offsets.astype(jnp.int32)
    ends = jnp.concatenate([offsets[1:], jnp.array([n_tokens], jnp.int32)])
    lengths = (ends - offsets).astype(jnp.int32)                    # [B]

    if max_len is None:
        # TODO(synk): needs concrete offsets (host sync); pass max_len explicitly under jit.
        max_len = int(jnp.max(lengths)) if B > 0 else 1
    L = max(int(max_len), 1)

    NBUF = int(fetch_depth)
    assert NBUF & (NBUF - 1) == 0, "fetch_depth must be a power of two"

    TB = _round_up(min(int(bags_per_tile), max(B, 1)), 8)           # bags per grid step
    TB = max(TB, NBUF)
    # Note (v7x): keep B_pad // TB >= 2 for real workloads so both TensorCores get grid steps.
    B_pad = _round_up(max(B, 1), TB)
    D_pad = _round_up(D, 128)                                       # lane-dense rows / matmul K
    C_pad = _round_up(C, 128)                                       # lane-dense output

    # ---- glue (plain JAX): ragged bags -> fixed [*, L] padded id rows, flattened for SMEM ----
    pos = jnp.arange(L, dtype=jnp.int32)
    gather_pos = jnp.clip(offsets[:, None] + pos[None, :], 0, max(n_tokens - 1, 0))
    idx = x_in.astype(jnp.int32)[gather_pos]                        # [B, L]
    # TODO(synk): PyTorch raises on out-of-range token ids; here they are clipped to keep DMAs in-bounds.
    idx = jnp.clip(idx, 0, V - 1)
    # Flat 1-D SMEM layout; NBUF spare (zero) bags cover the hoisted next-bag id reads.
    idx_flat = jnp.pad(idx, ((0, B_pad + NBUF - B), (0, 0))).reshape(-1)   # [(B_pad+NBUF)*L] i32
    lengths_p = jnp.pad(lengths, (0, B_pad - B))                            # [B_pad] i32

    # Embedding table stays in HBM in its own dtype (bf16 tables keep the 2x gather saving).
    emb_p = emb_w if D_pad == D else jnp.pad(emb_w, ((0, 0), (0, D_pad - D)))   # [V, D_pad]
    wt = jnp.pad(fc_w.T, ((0, D_pad - D), (0, C_pad - C)))                      # [D_pad, C_pad]
    bias = jnp.pad(fc_b.astype(jnp.float32), (0, C_pad - C))[None, :]           # [1, C_pad] f32

    kernel = functools.partial(_cat_classifier_kernel, tb=TB, L=L, nbuf=NBUF,
                               apply_sigmoid=bool(apply_sigmoid))

    out = pl.pallas_call(
        kernel,
        out_shape=jax.ShapeDtypeStruct((B_pad, C_pad), jnp.float32),
        grid_spec=pltpu.PrefetchScalarGridSpec(
            num_scalar_prefetch=2,                                  # idx_flat, lengths -> SMEM
            grid=(B_pad // TB,),
            in_specs=[
                pl.BlockSpec(memory_space=pl.ANY),                            # emb table in HBM
                pl.BlockSpec((D_pad, C_pad), lambda bt, idx, ln: (0, 0)),     # fc.weight^T
                pl.BlockSpec((1, C_pad), lambda bt, idx, ln: (0, 0)),         # fc.bias
            ],
            out_specs=pl.BlockSpec((TB, C_pad), lambda bt, idx, ln: (bt, 0)),
            scratch_shapes=[
                pltpu.VMEM((TB, D_pad), jnp.float32),               # per-bag means (fc input)
                pltpu.VMEM((NBUF, L, D_pad), emb_p.dtype),          # multi-buffered row gather
                pltpu.SemaphoreType.DMA((NBUF,)),
            ],
        ),
        compiler_params=pltpu.CompilerParams(
            dimension_semantics=("parallel",),                      # split batch tiles across TCs
        ),
    )(idx_flat, lengths_p, emb_p, wt, bias)

    return out[:B, :C]


def _reference_forward(x_in, offsets, emb_w, fc_w, fc_b, apply_sigmoid=False):
    """Pure-numpy reference of the PyTorch forward (EmbeddingBag mean + Linear)."""
    x = np.asarray(x_in)
    off = np.asarray(offsets)
    emb = np.asarray(emb_w).astype(np.float32)
    W = np.asarray(fc_w).astype(np.float32)
    b = np.asarray(fc_b).astype(np.float32)
    ends = np.concatenate([off[1:], np.array([x.shape[0]], off.dtype)])
    embedded = np.stack([emb[x[int(s):int(e)]].mean(axis=0) for s, e in zip(off, ends)])
    y = embedded @ W.T + b
    return 1.0 / (1.0 + np.exp(-y)) if apply_sigmoid else y


if __name__ == "__main__":
    key = jax.random.PRNGKey(0)

    # ---------- test 1: the module's toy shapes ----------
    vocab_size, embed_dim, num_class = 64, 32, 8
    k_emb, k_fc, k_tok, key = jax.random.split(key, 4)

    initrange = 0.5                                                  # init_weights()
    emb_w = jax.random.uniform(k_emb, (vocab_size, embed_dim), jnp.float32, -initrange, initrange)
    fc_w = jax.random.uniform(k_fc, (num_class, embed_dim), jnp.float32, -initrange, initrange)
    fc_b = jnp.zeros((num_class,), jnp.float32)

    x_in = jax.random.randint(k_tok, (13,), 1, vocab_size, dtype=jnp.int32)   # two bags: [0:6),[6:13)
    offsets = jnp.array([0, 6], dtype=jnp.int32)

    y = jax.block_until_ready(
        category_classifier_forward(x_in, offsets, emb_w, fc_w, fc_b,
                                    max_len=8, apply_sigmoid=False))
    y_sig = jax.block_until_ready(
        category_classifier_forward(x_in, offsets, emb_w, fc_w, fc_b,
                                    max_len=8, apply_sigmoid=True))

    np.testing.assert_allclose(np.asarray(y),
                               _reference_forward(x_in, offsets, emb_w, fc_w, fc_b, False),
                               rtol=5e-3, atol=5e-3)
    np.testing.assert_allclose(np.asarray(y_sig),
                               _reference_forward(x_in, offsets, emb_w, fc_w, fc_b, True),
                               rtol=5e-3, atol=5e-3)

    # ---------- test 2: ragged batch, multiple grid steps, padded D / C ----------
    vocab2, D2, C2, B2, L2 = 1000, 48, 20, 37, 8
    k_e2, k_f2, k_b2, k_len, k_tok2, key = jax.random.split(key, 6)

    emb_w2 = jax.random.uniform(k_e2, (vocab2, D2), jnp.float32, -0.5, 0.5)
    fc_w2 = jax.random.uniform(k_f2, (C2, D2), jnp.float32, -0.5, 0.5)
    fc_b2 = jax.random.uniform(k_b2, (C2,), jnp.float32, -0.1, 0.1)

    lengths2 = jax.random.randint(k_len, (B2,), 1, L2 + 1, dtype=jnp.int32)
    offsets2 = jnp.concatenate([jnp.zeros((1,), jnp.int32),
                                jnp.cumsum(lengths2)[:-1].astype(jnp.int32)])
    total2 = int(jnp.sum(lengths2))
    x_in2 = jax.random.randint(k_tok2, (total2,), 0, vocab2, dtype=jnp.int32)

    y2 = jax.block_until_ready(
        category_classifier_forward(x_in2, offsets2, emb_w2, fc_w2, fc_b2,
                                    max_len=L2, apply_sigmoid=False,
                                    bags_per_tile=16))               # 3 grid steps
    np.testing.assert_allclose(np.asarray(y2),
                               _reference_forward(x_in2, offsets2, emb_w2, fc_w2, fc_b2, False),
                               rtol=5e-3, atol=5e-3)

    print("KERNEL_OK")
</pallas_src>

<mosaic_0001>
module attributes {stable_mosaic.version = 11 : i64} {
  func.func @_cat_classifier_kernel(%arg0: i32, %arg1: memref<96xi32, #tpu.memory_space<smem>>, %arg2: memref<8xi32, #tpu.memory_space<smem>>, %arg3: memref<64x128xf32, #tpu.memory_space<any>>, %arg4: memref<128x128xf32, #tpu.memory_space<vmem>>, %arg5: memref<1x128xf32, #tpu.memory_space<vmem>>, %arg6: memref<8x128xf32, #tpu.memory_space<vmem>>, %arg7: memref<8x128xf32, #tpu.memory_space<vmem>>, %arg8: memref<4x8x128xf32, #tpu.memory_space<vmem>>, %arg9: memref<4x!tpu.dma_semaphore, #tpu.memory_space<semaphore_mem>>) attributes {dimension_semantics = [#tpu.dimension_semantics<parallel>], iteration_bounds = array<i64: 1>, scalar_prefetch = 2 : i64, scratch_operands = 3 : i64, tpu.core_type = #tpu.core_type<tc>, window_params = [{}, {pipeline_mode = #tpu.pipeline_mode<synchronous>, transform_indices = @transform_1, window_bounds = array<i64: 128, 128>}, {pipeline_mode = #tpu.pipeline_mode<synchronous>, transform_indices = @transform_2, window_bounds = array<i64: 1, 128>}, {transform_indices = @transform_3, window_bounds = array<i64: 8, 128>}]} {
    %c8_i32 = arith.constant 8 : i32
    %0 = arith.muli %arg0, %c8_i32 : i32
    %c0_i32 = arith.constant 0 : i32
    %1 = arith.addi %0, %c0_i32 : i32
    %c8_i32_0 = arith.constant 8 : i32
    %2 = arith.muli %1, %c8_i32_0 : i32
    %c0_i32_1 = arith.constant 0 : i32
    %3 = arith.addi %2, %c0_i32_1 : i32
    %4 = arith.index_cast %3 : i32 to index
    %5 = memref.load %arg1[%4] : memref<96xi32, #tpu.memory_space<smem>>
    %c1_i32 = arith.constant 1 : i32
    %6 = arith.addi %2, %c1_i32 : i32
    %7 = arith.index_cast %6 : i32 to index
    %8 = memref.load %arg1[%7] : memref<96xi32, #tpu.memory_space<smem>>
    %c2_i32 = arith.constant 2 : i32
    %9 = arith.addi %2, %c2_i32 : i32
    %10 = arith.index_cast %9 : i32 to index
    %11 = memref.load %arg1[%10] : memref<96xi32, #tpu.memory_space<smem>>
    %c3_i32 = arith.constant 3 : i32
    %12 = arith.addi %2, %c3_i32 : i32
    %13 = arith.index_cast %12 : i32 to index
    %14 = memref.load %arg1[%13] : memref<96xi32, #tpu.memory_space<smem>>
    %c4_i32 = arith.constant 4 : i32
    %15 = arith.addi %2, %c4_i32 : i32
    %16 = arith.index_cast %15 : i32 to index
    %17 = memref.load %arg1[%16] : memref<96xi32, #tpu.memory_space<smem>>
    %c5_i32 = arith.constant 5 : i32
    %18 = arith.addi %2, %c5_i32 : i32
    %19 = arith.index_cast %18 : i32 to index
    %20 = memref.load %arg1[%19] : memref<96xi32, #tpu.memory_space<smem>>
    %c6_i32 = arith.constant 6 : i32
    %21 = arith.addi %2, %c6_i32 : i32
    %22 = arith.index_cast %21 : i32 to index
    %23 = memref.load %arg1[%22] : memref<96xi32, #tpu.memory_space<smem>>
    %c7_i32 = arith.constant 7 : i32
    %24 = arith.addi %2, %c7_i32 : i32
    %25 = arith.index_cast %24 : i32 to index
    %26 = memref.load %arg1[%25] : memref<96xi32, #tpu.memory_space<smem>>
    %c0_i32_2 = arith.constant 0 : i32
    %c0_i32_3 = arith.constant 0 : i32
    %c0_i32_4 = arith.constant 0 : i32
    %27 = tpu.memref_slice %arg3[%5, %c0_i32_4] : memref<64x128xf32, #tpu.memory_space<any>> -> memref<1x128xf32, #tpu.memory_space<any>>
    %c0_i32_5 = arith.constant 0 : i32
    %c0_i32_6 = arith.constant 0 : i32
    %28 = tpu.memref_slice %arg8[%c0_i32_2, %c0_i32_5, %c0_i32_6] : memref<4x8x128xf32, #tpu.memory_space<vmem>> -> memref<1x1x128xf32, #tpu.memory_space<vmem>>
    %29 = tpu.memref_squeeze %28 : memref<1x1x128xf32, #tpu.memory_space<vmem>> -> memref<1x128xf32, #tpu.memory_space<vmem>>
    %30 = tpu.memref_slice %arg9[%c0_i32_3] : memref<4x!tpu.dma_semaphore, #tpu.memory_space<semaphore_mem>> -> memref<1x!tpu.dma_semaphore, #tpu.memory_space<semaphore_mem>>
    %31 = tpu.memref_squeeze %30 : memref<1x!tpu.dma_semaphore, #tpu.memory_space<semaphore_mem>> -> memref<!tpu.dma_semaphore, #tpu.memory_space<semaphore_mem>>
    tpu.enqueue_dma source(%27 : memref<1x128xf32, #tpu.memory_space<any>>) target(%29 : memref<1x128xf32, #tpu.memory_space<vmem>>) target_semaphore(%31 : memref<!tpu.dma_semaphore, #tpu.memory_space<semaphore_mem>>)
    %c0_i32_7 = arith.constant 0 : i32
    %c0_i32_8 = arith.constant 0 : i32
    %c0_i32_9 = arith.constant 0 : i32
    %32 = tpu.memref_slice %arg3[%8, %c0_i32_9] : memref<64x128xf32, #tpu.memory_space<any>> -> memref<1x128xf32, #tpu.memory_space<any>>
    %c1_i32_10 = arith.constant 1 : i32
    %c0_i32_11 = arith.constant 0 : i32
    %33 = tpu.memref_slice %arg8[%c0_i32_7, %c1_i32_10, %c0_i32_11] : memref<4x8x128xf32, #tpu.memory_space<vmem>> -> memref<1x1x128xf32, #tpu.memory_space<vmem>>
    %34 = tpu.memref_squeeze %33 : memref<1x1x128xf32, #tpu.memory_space<vmem>> -> memref<1x128xf32, #tpu.memory_space<vmem>>
    %35 = tpu.memref_slice %arg9[%c0_i32_8] : memref<4x!tpu.dma_semaphore, #tpu.memory_space<semaphore_mem>> -> memref<1x!tpu.dma_semaphore, #tpu.memory_space<semaphore_mem>>
    %36 = tpu.memref_squeeze %35 : memref<1x!tpu.dma_semaphore, #tpu.memory_space<semaphore_mem>> -> memref<!tpu.dma_semaphore, #tpu.memory_space<semaphore_mem>>
    tpu.enqueue_dma source(%32 : memref<1x128xf32, #tpu.memory_space<any>>) target(%34 : memref<1x128xf32, #tpu.memory_space<vmem>>) target_semaphore(%36 : memref<!tpu.dma_semaphore, #tpu.memory_space<semaphore_mem>>)
    %c0_i32_12 = arith.constant 0 : i32
    %c0_i32_13 = arith.constant 0 : i32
    %c0_i32_14 = arith.constant 0 : i32
    %37 = tpu.memref_slice %arg3[%11, %c0_i32_14] : memref<64x128xf32, #tpu.memory_space<any>> -> memref<1x128xf32, #tpu.memory_space<any>>
    %c2_i32_15 = arith.constant 2 : i32
    %c0_i32_16 = arith.constant 0 : i32
    %38 = tpu.memref_slice %arg8[%c0_i32_12, %c2_i32_15, %c0_i32_16] : memref<4x8x128xf32, #tpu.memory_space<vmem>> -> memref<1x1x128xf32, #tpu.memory_space<vmem>>
    %39 = tpu.memref_squeeze %38 : memref<1x1x128xf32, #tpu.memory_space<vmem>> -> memref<1x128xf32, #tpu.memory_space<vmem>>
    %40 = tpu.memref_slice %arg9[%c0_i32_13] : memref<4x!tpu.dma_semaphore, #tpu.memory_space<semaphore_mem>> -> memref<1x!tpu.dma_semaphore, #tpu.memory_space<semaphore_mem>>
    %41 = tpu.memref_squeeze %40 : memref<1x!tpu.dma_semaphore, #tpu.memory_space<semaphore_mem>> -> memref<!tpu.dma_semaphore, #tpu.memory_space<semaphore_mem>>
    tpu.enqueue_dma source(%37 : memref<1x128xf32, #tpu.memory_space<any>>) target(%39 : memref<1x128xf32, #tpu.memory_space<vmem>>) target_semaphore(%41 : memref<!tpu.dma_semaphore, #tpu.memory_space<semaphore_mem>>)
    %c0_i32_17 = arith.constant 0 : i32
    %c0_i32_18 = arith.constant 0 : i32
    %c0_i32_19 = arith.constant 0 : i32
    %42 = tpu.memref_slice %arg3[%14, %c0_i32_19] : memref<64x128xf32, #tpu.memory_space<any>> -> memref<1x128xf32, #tpu.memory_space<any>>
    %c3_i32_20 = arith.constant 3 : i32
    %c0_i32_21 = arith.constant 0 : i32
    %43 = tpu.memref_slice %arg8[%c0_i32_17, %c3_i32_20, %c0_i32_21] : memref<4x8x128xf32, #tpu.memory_space<vmem>> -> memref<1x1x128xf32, #tpu.memory_space<vmem>>
    %44 = tpu.memref_squeeze %43 : memref<1x1x128xf32, #tpu.memory_space<vmem>> -> memref<1x128xf32, #tpu.memory_space<vmem>>
    %45 = tpu.memref_slice %arg9[%c0_i32_18] : memref<4x!tpu.dma_semaphore, #tpu.memory_space<semaphore_mem>> -> memref<1x!tpu.dma_semaphore, #tpu.memory_space<semaphore_mem>>
    %46 = tpu.memref_squeeze %45 : memref<1x!tpu.dma_semaphore, #tpu.memory_space<semaphore_mem>> -> memref<!tpu.dma_semaphore, #tpu.memory_space<semaphore_mem>>
    tpu.enqueue_dma source(%42 : memref<1x128xf32, #tpu.memory_space<any>>) target(%44 : memref<1x128xf32, #tpu.memory_space<vmem>>) target_semaphore(%46 : memref<!tpu.dma_semaphore, #tpu.memory_space<semaphore_mem>>)
    %c0_i32_22 = arith.constant 0 : i32
    %c0_i32_23 = arith.constant 0 : i32
    %c0_i32_24 = arith.constant 0 : i32
    %47 = tpu.memref_slice %arg3[%17, %c0_i32_24] : memref<64x128xf32, #tpu.memory_space<any>> -> memref<1x128xf32, #tpu.memory_space<any>>
    %c4_i32_25 = arith.constant 4 : i32
    %c0_i32_26 = arith.constant 0 : i32
    %48 = tpu.memref_slice %arg8[%c0_i32_22, %c4_i32_25, %c0_i32_26] : memref<4x8x128xf32, #tpu.memory_space<vmem>> -> memref<1x1x128xf32, #tpu.memory_space<vmem>>
    %49 = tpu.memref_squeeze %48 : memref<1x1x128xf32, #tpu.memory_space<vmem>> -> memref<1x128xf32, #tpu.memory_space<vmem>>
    %50 = tpu.memref_slice %arg9[%c0_i32_23] : memref<4x!tpu.dma_semaphore, #tpu.memory_space<semaphore_mem>> -> memref<1x!tpu.dma_semaphore, #tpu.memory_space<semaphore_mem>>
    %51 = tpu.memref_squeeze %50 : memref<1x!tpu.dma_semaphore, #tpu.memory_space<semaphore_mem>> -> memref<!tpu.dma_semaphore, #tpu.memory_space<semaphore_mem>>
    tpu.enqueue_dma source(%47 : memref<1x128xf32, #tpu.memory_space<any>>) target(%49 : memref<1x128xf32, #tpu.memory_space<vmem>>) target_semaphore(%51 : memref<!tpu.dma_semaphore, #tpu.memory_space<semaphore_mem>>)
    %c0_i32_27 = arith.constant 0 : i32
    %c0_i32_28 = arith.constant 0 : i32
    %c0_i32_29 = arith.constant 0 : i32
    %52 = tpu.memref_slice %arg3[%20, %c0_i32_29] : memref<64x128xf32, #tpu.memory_space<any>> -> memref<1x128xf32, #tpu.memory_space<any>>
    %c5_i32_30 = arith.constant 5 : i32
    %c0_i32_31 = arith.constant 0 : i32
    %53 = tpu.memref_slice %arg8[%c0_i32_27, %c5_i32_30, %c0_i32_31] : memref<4x8x128xf32, #tpu.memory_space<vmem>> -> memref<1x1x128xf32, #tpu.memory_space<vmem>>
    %54 = tpu.memref_squeeze %53 : memref<1x1x128xf32, #tpu.memory_space<vmem>> -> memref<1x128xf32, #tpu.memory_space<vmem>>
    %55 = tpu.memref_slice %arg9[%c0_i32_28] : memref<4x!tpu.dma_semaphore, #tpu.memory_space<semaphore_mem>> -> memref<1x!tpu.dma_semaphore, #tpu.memory_space<semaphore_mem>>
    %56 = tpu.memref_squeeze %55 : memref<1x!tpu.dma_semaphore, #tpu.memory_space<semaphore_mem>> -> memref<!tpu.dma_semaphore, #tpu.memory_space<semaphore_mem>>
    tpu.enqueue_dma source(%52 : memref<1x128xf32, #tpu.memory_space<any>>) target(%54 : memref<1x128xf32, #tpu.memory_space<vmem>>) target_semaphore(%56 : memref<!tpu.dma_semaphore, #tpu.memory_space<semaphore_mem>>)
    %c0_i32_32 = arith.constant 0 : i32
    %c0_i32_33 = arith.constant 0 : i32
    %c0_i32_34 = arith.constant 0 : i32
    %57 = tpu.memref_slice %arg3[%23, %c0_i32_34] : memref<64x128xf32, #tpu.memory_space<any>> -> memref<1x128xf32, #tpu.memory_space<any>>
    %c6_i32_35 = arith.constant 6 : i32
    %c0_i32_36 = arith.constant 0 : i32
    %58 = tpu.memref_slice %arg8[%c0_i32_32, %c6_i32_35, %c0_i32_36] : memref<4x8x128xf32, #tpu.memory_space<vmem>> -> memref<1x1x128xf32, #tpu.memory_space<vmem>>
    %59 = tpu.memref_squeeze %58 : memref<1x1x128xf32, #tpu.memory_space<vmem>> -> memref<1x128xf32, #tpu.memory_space<vmem>>
    %60 = tpu.memref_slice %arg9[%c0_i32_33] : memref<4x!tpu.dma_semaphore, #tpu.memory_space<semaphore_mem>> -> memref<1x!tpu.dma_semaphore, #tpu.memory_space<semaphore_mem>>
    %61 = tpu.memref_squeeze %60 : memref<1x!tpu.dma_semaphore, #tpu.memory_space<semaphore_mem>> -> memref<!tpu.dma_semaphore, #tpu.memory_space<semaphore_mem>>
    tpu.enqueue_dma source(%57 : memref<1x128xf32, #tpu.memory_space<any>>) target(%59 : memref<1x128xf32, #tpu.memory_space<vmem>>) target_semaphore(%61 : memref<!tpu.dma_semaphore, #tpu.memory_space<semaphore_mem>>)
    %c0_i32_37 = arith.constant 0 : i32
    %c0_i32_38 = arith.constant 0 : i32
    %c0_i32_39 = arith.constant 0 : i32
    %62 = tpu.memref_slice %arg3[%26, %c0_i32_39] : memref<64x128xf32, #tpu.memory_space<any>> -> memref<1x128xf32, #tpu.memory_space<any>>
    %c7_i32_40 = arith.constant 7 : i32
    %c0_i32_41 = arith.constant 0 : i32
    %63 = tpu.memref_slice %arg8[%c0_i32_37, %c7_i32_40, %c0_i32_41] : memref<4x8x128xf32, #tpu.memory_space<vmem>> -> memref<1x1x128xf32, #tpu.memory_space<vmem>>
    %64 = tpu.memref_squeeze %63 : memref<1x1x128xf32, #tpu.memory_space<vmem>> -> memref<1x128xf32, #tpu.memory_space<vmem>>
    %65 = tpu.memref_slice %arg9[%c0_i32_38] : memref<4x!tpu.dma_semaphore, #tpu.memory_space<semaphore_mem>> -> memref<1x!tpu.dma_semaphore, #tpu.memory_space<semaphore_mem>>
    %66 = tpu.memref_squeeze %65 : memref<1x!tpu.dma_semaphore, #tpu.memory_space<semaphore_mem>> -> memref<!tpu.dma_semaphore, #tpu.memory_space<semaphore_mem>>
    tpu.enqueue_dma source(%62 : memref<1x128xf32, #tpu.memory_space<any>>) target(%64 : memref<1x128xf32, #tpu.memory_space<vmem>>) target_semaphore(%66 : memref<!tpu.dma_semaphore, #tpu.memory_space<semaphore_mem>>)
    %c1_i32_42 = arith.constant 1 : i32
    %67 = arith.addi %0, %c1_i32_42 : i32
    %c8_i32_43 = arith.constant 8 : i32
    %68 = arith.muli %67, %c8_i32_43 : i32
    %c0_i32_44 = arith.constant 0 : i32
    %69 = arith.addi %68, %c0_i32_44 : i32
    %70 = arith.index_cast %69 : i32 to index
    %71 = memref.load %arg1[%70] : memref<96xi32, #tpu.memory_space<smem>>
    %c1_i32_45 = arith.constant 1 : i32
    %72 = arith.addi %68, %c1_i32_45 : i32
    %73 = arith.index_cast %72 : i32 to index
    %74 = memref.load %arg1[%73] : memref<96xi32, #tpu.memory_space<smem>>
    %c2_i32_46 = arith.constant 2 : i32
    %75 = arith.addi %68, %c2_i32_46 : i32
    %76 = arith.index_cast %75 : i32 to index
    %77 = memref.load %arg1[%76] : memref<96xi32, #tpu.memory_space<smem>>
    %c3_i32_47 = arith.constant 3 : i32
    %78 = arith.addi %68, %c3_i32_47 : i32
    %79 = arith.index_cast %78 : i32 to index
    %80 = memref.load %arg1[%79] : memref<96xi32, #tpu.memory_space<smem>>
    %c4_i32_48 = arith.constant 4 : i32
    %81 = arith.addi %68, %c4_i32_48 : i32
    %82 = arith.index_cast %81 : i32 to index
    %83 = memref.load %arg1[%82] : memref<96xi32, #tpu.memory_space<smem>>
    %c5_i32_49 = arith.constant 5 : i32
    %84 = arith.addi %68, %c5_i32_49 : i32
    %85 = arith.index_cast %84 : i32 to index
    %86 = memref.load %arg1[%85] : memref<96xi32, #tpu.memory_space<smem>>
    %c6_i32_50 = arith.constant 6 : i32
    %87 = arith.addi %68, %c6_i32_50 : i32
    %88 = arith.index_cast %87 : i32 to index
    %89 = memref.load %arg1[%88] : memref<96xi32, #tpu.memory_space<smem>>
    %c7_i32_51 = arith.constant 7 : i32
    %90 = arith.addi %68, %c7_i32_51 : i32
    %91 = arith.index_cast %90 : i32 to index
    %92 = memref.load %arg1[%91] : memref<96xi32, #tpu.memory_space<smem>>
    %c1_i32_52 = arith.constant 1 : i32
    %c1_i32_53 = arith.constant 1 : i32
    %c0_i32_54 = arith.constant 0 : i32
    %93 = tpu.memref_slice %arg3[%71, %c0_i32_54] : memref<64x128xf32, #tpu.memory_space<any>> -> memref<1x128xf32, #tpu.memory_space<any>>
    %c0_i32_55 = arith.constant 0 : i32
    %c0_i32_56 = arith.constant 0 : i32
    %94 = tpu.memref_slice %arg8[%c1_i32_52, %c0_i32_55, %c0_i32_56] : memref<4x8x128xf32, #tpu.memory_space<vmem>> -> memref<1x1x128xf32, #tpu.memory_space<vmem>>
    %95 = tpu.memref_squeeze %94 : memref<1x1x128xf32, #tpu.memory_space<vmem>> -> memref<1x128xf32, #tpu.memory_space<vmem>>
    %96 = tpu.memref_slice %arg9[%c1_i32_53] : memref<4x!tpu.dma_semaphore, #tpu.memory_space<semaphore_mem>> -> memref<1x!tpu.dma_semaphore, #tpu.memory_space<semaphore_mem>>
    %97 = tpu.memref_squeeze %96 : memref<1x!tpu.dma_semaphore, #tpu.memory_space<semaphore_mem>> -> memref<!tpu.dma_semaphore, #tpu.memory_space<semaphore_mem>>
    tpu.enqueue_dma source(%93 : memref<1x128xf32, #tpu.memory_space<any>>) target(%95 : memref<1x128xf32, #tpu.memory_space<vmem>>) target_semaphore(%97 : memref<!tpu.dma_semaphore, #tpu.memory_space<semaphore_mem>>)
    %c1_i32_57 = arith.constant 1 : i32
    %c1_i32_58 = arith.constant 1 : i32
    %c0_i32_59 = arith.constant 0 : i32
    %98 = tpu.memref_slice %arg3[%74, %c0_i32_59] : memref<64x128xf32, #tpu.memory_space<any>> -> memref<1x128xf32, #tpu.memory_space<any>>
    %c1_i32_60 = arith.constant 1 : i32
    %c0_i32_61 = arith.constant 0 : i32
    %99 = tpu.memref_slice %arg8[%c1_i32_57, %c1_i32_60, %c0_i32_61] : memref<4x8x128xf32, #tpu.memory_space<vmem>> -> memref<1x1x128xf32, #tpu.memory_space<vmem>>
    %100 = tpu.memref_squeeze %99 : memref<1x1x128xf32, #tpu.memory_space<vmem>> -> memref<1x128xf32, #tpu.memory_space<vmem>>
    %101 = tpu.memref_slice %arg9[%c1_i32_58] : memref<4x!tpu.dma_semaphore, #tpu.memory_space<semaphore_mem>> -> memref<1x!tpu.dma_semaphore, #tpu.memory_space<semaphore_mem>>
    %102 = tpu.memref_squeeze %101 : memref<1x!tpu.dma_semaphore, #tpu.memory_space<semaphore_mem>> -> memref<!tpu.dma_semaphore, #tpu.memory_space<semaphore_mem>>
    tpu.enqueue_dma source(%98 : memref<1x128xf32, #tpu.memory_space<any>>) target(%100 : memref<1x128xf32, #tpu.memory_space<vmem>>) target_semaphore(%102 : memref<!tpu.dma_semaphore, #tpu.memory_space<semaphore_mem>>)
    %c1_i32_62 = arith.constant 1 : i32
    %c1_i32_63 = arith.constant 1 : i32
    %c0_i32_64 = arith.constant 0 : i32
    %103 = tpu.memref_slice %arg3[%77, %c0_i32_64] : memref<64x128xf32, #tpu.memory_space<any>> -> memref<1x128xf32, #tpu.memory_space<any>>
    %c2_i32_65 = arith.constant 2 : i32
    %c0_i32_66 = arith.constant 0 : i32
    %104 = tpu.memref_slice %arg8[%c1_i32_62, %c2_i32_65, %c0_i32_66] : memref<4x8x128xf32, #tpu.memory_space<vmem>> -> memref<1x1x128xf32, #tpu.memory_space<vmem>>
    %105 = tpu.memref_squeeze %104 : memref<1x1x128xf32, #tpu.memory_space<vmem>> -> memref<1x128xf32, #tpu.memory_space<vmem>>
    %106 = tpu.memref_slice %arg9[%c1_i32_63] : memref<4x!tpu.dma_semaphore, #tpu.memory_space<semaphore_mem>> -> memref<1x!tpu.dma_semaphore, #tpu.memory_space<semaphore_mem>>
    %107 = tpu.memref_squeeze %106 : memref<1x!tpu.dma_semaphore, #tpu.memory_space<semaphore_mem>> -> memref<!tpu.dma_semaphore, #tpu.memory_space<semaphore_mem>>
    tpu.enqueue_dma source(%103 : memref<1x128xf32, #tpu.memory_space<any>>) target(%105 : memref<1x128xf32, #tpu.memory_space<vmem>>) target_semaphore(%107 : memref<!tpu.dma_semaphore, #tpu.memory_space<semaphore_mem>>)
    %c1_i32_67 = arith.constant 1 : i32
    %c1_i32_68 = arith.constant 1 : i32
    %c0_i32_69 = arith.constant 0 : i32
    %108 = tpu.memref_slice %arg3[%80, %c0_i32_69] : memref<64x128xf32, #tpu.memory_space<any>> -> memref<1x128xf32, #tpu.memory_space<any>>
    %c3_i32_70 = arith.constant 3 : i32
    %c0_i32_71 = arith.constant 0 : i32
    %109 = tpu.memref_slice %arg8[%c1_i32_67, %c3_i32_70, %c0_i32_71] : memref<4x8x128xf32, #tpu.memory_space<vmem>> -> memref<1x1x128xf32, #tpu.memory_space<vmem>>
    %110 = tpu.memref_squeeze %109 : memref<1x1x128xf32, #tpu.memory_space<vmem>> -> memref<1x128xf32, #tpu.memory_space<vmem>>
    %111 = tpu.memref_slice %arg9[%c1_i32_68] : memref<4x!tpu.dma_semaphore, #tpu.memory_space<semaphore_mem>> -> memref<1x!tpu.dma_semaphore, #tpu.memory_space<semaphore_mem>>
    %112 = tpu.memref_squeeze %111 : memref<1x!tpu.dma_semaphore, #tpu.memory_space<semaphore_mem>> -> memref<!tpu.dma_semaphore, #tpu.memory_space<semaphore_mem>>
    tpu.enqueue_dma source(%108 : memref<1x128xf32, #tpu.memory_space<any>>) target(%110 : memref<1x128xf32, #tpu.memory_space<vmem>>) target_semaphore(%112 : memref<!tpu.dma_semaphore, #tpu.memory_space<semaphore_mem>>)
    %c1_i32_72 = arith.constant 1 : i32
    %c1_i32_73 = arith.constant 1 : i32
    %c0_i32_74 = arith.constant 0 : i32
    %113 = tpu.memref_slice %arg3[%83, %c0_i32_74] : memref<64x128xf32, #tpu.memory_space<any>> -> memref<1x128xf32, #tpu.memory_space<any>>
    %c4_i32_75 = arith.constant 4 : i32
    %c0_i32_76 = arith.constant 0 : i32
    %114 = tpu.memref_slice %arg8[%c1_i32_72, %c4_i32_75, %c0_i32_76] : memref<4x8x128xf32, #tpu.memory_space<vmem>> -> memref<1x1x128xf32, #tpu.memory_space<vmem>>
    %115 = tpu.memref_squeeze %114 : memref<1x1x128xf32, #tpu.memory_space<vmem>> -> memref<1x128xf32, #tpu.memory_space<vmem>>
    %116 = tpu.memref_slice %arg9[%c1_i32_73] : memref<4x!tpu.dma_semaphore, #tpu.memory_space<semaphore_mem>> -> memref<1x!tpu.dma_semaphore, #tpu.memory_space<semaphore_mem>>
    %117 = tpu.memref_squeeze %116 : memref<1x!tpu.dma_semaphore, #tpu.memory_space<semaphore_mem>> -> memref<!tpu.dma_semaphore, #tpu.memory_space<semaphore_mem>>
    tpu.enqueue_dma source(%113 : memref<1x128xf32, #tpu.memory_space<any>>) target(%115 : memref<1x128xf32, #tpu.memory_space<vmem>>) target_semaphore(%117 : memref<!tpu.dma_semaphore, #tpu.memory_space<semaphore_mem>>)
    %c1_i32_77 = arith.constant 1 : i32
    %c1_i32_78 = arith.constant 1 : i32
    %c0_i32_79 = arith.constant 0 : i32
    %118 = tpu.memref_slice %arg3[%86, %c0_i32_79] : memref<64x128xf32, #tpu.memory_space<any>> -> memref<1x128xf32, #tpu.memory_space<any>>
    %c5_i32_80 = arith.constant 5 : i32
    %c0_i32_81 = arith.constant 0 : i32
    %119 = tpu.memref_slice %arg8[%c1_i32_77, %c5_i32_80, %c0_i32_81] : memref<4x8x128xf32, #tpu.memory_space<vmem>> -> memref<1x1x128xf32, #tpu.memory_space<vmem>>
    %120 = tpu.memref_squeeze %119 : memref<1x1x128xf32, #tpu.memory_space<vmem>> -> memref<1x128xf32, #tpu.memory_space<vmem>>
    %121 = tpu.memref_slice %arg9[%c1_i32_78] : memref<4x!tpu.dma_semaphore, #tpu.memory_space<semaphore_mem>> -> memref<1x!tpu.dma_semaphore, #tpu.memory_space<semaphore_mem>>
    %122 = tpu.memref_squeeze %121 : memref<1x!tpu.dma_semaphore, #tpu.memory_space<semaphore_mem>> -> memref<!tpu.dma_semaphore, #tpu.memory_space<semaphore_mem>>
    tpu.enqueue_dma source(%118 : memref<1x128xf32, #tpu.memory_space<any>>) target(%120 : memref<1x128xf32, #tpu.memory_space<vmem>>) target_semaphore(%122 : memref<!tpu.dma_semaphore, #tpu.memory_space<semaphore_mem>>)
    %c1_i32_82 = arith.constant 1 : i32
    %c1_i32_83 = arith.constant 1 : i32
    %c0_i32_84 = arith.constant 0 : i32
    %123 = tpu.memref_slice %arg3[%89, %c0_i32_84] : memref<64x128xf32, #tpu.memory_space<any>> -> memref<1x128xf32, #tpu.memory_space<any>>
    %c6_i32_85 = arith.constant 6 : i32
    %c0_i32_86 = arith.constant 0 : i32
    %124 = tpu.memref_slice %arg8[%c1_i32_82, %c6_i32_85, %c0_i32_86] : memref<4x8x128xf32, #tpu.memory_space<vmem>> -> memref<1x1x128xf32, #tpu.memory_space<vmem>>
    %125 = tpu.memref_squeeze %124 : memref<1x1x128xf32, #tpu.memory_space<vmem>> -> memref<1x128xf32, #tpu.memory_space<vmem>>
    %126 = tpu.memref_slice %arg9[%c1_i32_83] : memref<4x!tpu.dma_semaphore, #tpu.memory_space<semaphore_mem>> -> memref<1x!tpu.dma_semaphore, #tpu.memory_space<semaphore_mem>>
    %127 = tpu.memref_squeeze %126 : memref<1x!tpu.dma_semaphore, #tpu.memory_space<semaphore_mem>> -> memref<!tpu.dma_semaphore, #tpu.memory_space<semaphore_mem>>
    tpu.enqueue_dma source(%123 : memref<1x128xf32, #tpu.memory_space<any>>) target(%125 : memref<1x128xf32, #tpu.memory_space<vmem>>) target_semaphore(%127 : memref<!tpu.dma_semaphore, #tpu.memory_space<semaphore_mem>>)
    %c1_i32_87 = arith.constant 1 : i32
    %c1_i32_88 = arith.constant 1 : i32
    %c0_i32_89 = arith.constant 0 : i32
    %128 = tpu.memref_slice %arg3[%92, %c0_i32_89] : memref<64x128xf32, #tpu.memory_space<any>> -> memref<1x128xf32, #tpu.memory_space<any>>
    %c7_i32_90 = arith.constant 7 : i32
    %c0_i32_91 = arith.constant 0 : i32
    %129 = tpu.memref_slice %arg8[%c1_i32_87, %c7_i32_90, %c0_i32_91] : memref<4x8x128xf32, #tpu.memory_space<vmem>> -> memref<1x1x128xf32, #tpu.memory_space<vmem>>
    %130 = tpu.memref_squeeze %129 : memref<1x1x128xf32, #tpu.memory_space<vmem>> -> memref<1x128xf32, #tpu.memory_space<vmem>>
    %131 = tpu.memref_slice %arg9[%c1_i32_88] : memref<4x!tpu.dma_semaphore, #tpu.memory_space<semaphore_mem>> -> memref<1x!tpu.dma_semaphore, #tpu.memory_space<semaphore_mem>>
    %132 = tpu.memref_squeeze %131 : memref<1x!tpu.dma_semaphore, #tpu.memory_space<semaphore_mem>> -> memref<!tpu.dma_semaphore, #tpu.memory_space<semaphore_mem>>
    tpu.enqueue_dma source(%128 : memref<1x128xf32, #tpu.memory_space<any>>) target(%130 : memref<1x128xf32, #tpu.memory_space<vmem>>) target_semaphore(%132 : memref<!tpu.dma_semaphore, #tpu.memory_space<semaphore_mem>>)
    %c2_i32_92 = arith.constant 2 : i32
    %133 = arith.addi %0, %c2_i32_92 : i32
    %c8_i32_93 = arith.constant 8 : i32
    %134 = arith.muli %133, %c8_i32_93 : i32
    %c0_i32_94 = arith.constant 0 : i32
    %135 = arith.addi %134, %c0_i32_94 : i32
    %136 = arith.index_cast %135 : i32 to index
    %137 = memref.load %arg1[%136] : memref<96xi32, #tpu.memory_space<smem>>
    %c1_i32_95 = arith.constant 1 : i32
    %138 = arith.addi %134, %c1_i32_95 : i32
    %139 = arith.index_cast %138 : i32 to index
    %140 = memref.load %arg1[%139] : memref<96xi32, #tpu.memory_space<smem>>
    %c2_i32_96 = arith.constant 2 : i32
    %141 = arith.addi %134, %c2_i32_96 : i32
    %142 = arith.index_cast %141 : i32 to index
    %143 = memref.load %arg1[%142] : memref<96xi32, #tpu.memory_space<smem>>
    %c3_i32_97 = arith.constant 3 : i32
    %144 = arith.addi %134, %c3_i32_97 : i32
    %145 = arith.index_cast %144 : i32 to index
    %146 = memref.load %arg1[%145] : memref<96xi32, #tpu.memory_space<smem>>
    %c4_i32_98 = arith.constant 4 : i32
    %147 = arith.addi %134, %c4_i32_98 : i32
    %148 = arith.index_cast %147 : i32 to index
    %149 = memref.load %arg1[%148] : memref<96xi32, #tpu.memory_space<smem>>
    %c5_i32_99 = arith.constant 5 : i32
    %150 = arith.addi %134, %c5_i32_99 : i32
    %151 = arith.index_cast %150 : i32 to index
    %152 = memref.load %arg1[%151] : memref<96xi32, #tpu.memory_space<smem>>
    %c6_i32_100 = arith.constant 6 : i32
    %153 = arith.addi %134, %c6_i32_100 : i32
    %154 = arith.index_cast %153 : i32 to index
    %155 = memref.load %arg1[%154] : memref<96xi32, #tpu.memory_space<smem>>
    %c7_i32_101 = arith.constant 7 : i32
    %156 = arith.addi %134, %c7_i32_101 : i32
    %157 = arith.index_cast %156 : i32 to index
    %158 = memref.load %arg1[%157] : memref<96xi32, #tpu.memory_space<smem>>
    %c2_i32_102 = arith.constant 2 : i32
    %c2_i32_103 = arith.constant 2 : i32
    %c0_i32_104 = arith.constant 0 : i32
    %159 = tpu.memref_slice %arg3[%137, %c0_i32_104] : memref<64x128xf32, #tpu.memory_space<any>> -> memref<1x128xf32, #tpu.memory_space<any>>
    %c0_i32_105 = arith.constant 0 : i32
    %c0_i32_106 = arith.constant 0 : i32
    %160 = tpu.memref_slice %arg8[%c2_i32_102, %c0_i32_105, %c0_i32_106] : memref<4x8x128xf32, #tpu.memory_space<vmem>> -> memref<1x1x128xf32, #tpu.memory_space<vmem>>
    %161 = tpu.memref_squeeze %160 : memref<1x1x128xf32, #tpu.memory_space<vmem>> -> memref<1x128xf32, #tpu.memory_space<vmem>>
    %162 = tpu.memref_slice %arg9[%c2_i32_103] : memref<4x!tpu.dma_semaphore, #tpu.memory_space<semaphore_mem>> -> memref<1x!tpu.dma_semaphore, #tpu.memory_space<semaphore_mem>>
    %163 = tpu.memref_squeeze %162 : memref<1x!tpu.dma_semaphore, #tpu.memory_space<semaphore_mem>> -> memref<!tpu.dma_semaphore, #tpu.memory_space<semaphore_mem>>
    tpu.enqueue_dma source(%159 : memref<1x128xf32, #tpu.memory_space<any>>) target(%161 : memref<1x128xf32, #tpu.memory_space<vmem>>) target_semaphore(%163 : memref<!tpu.dma_semaphore, #tpu.memory_space<semaphore_mem>>)
    %c2_i32_107 = arith.constant 2 : i32
    %c2_i32_108 = arith.constant 2 : i32
    %c0_i32_109 = arith.constant 0 : i32
    %164 = tpu.memref_slice %arg3[%140, %c0_i32_109] : memref<64x128xf32, #tpu.memory_space<any>> -> memref<1x128xf32, #tpu.memory_space<any>>
    %c1_i32_110 = arith.constant 1 : i32
    %c0_i32_111 = arith.constant 0 : i32
    %165 = tpu.memref_slice %arg8[%c2_i32_107, %c1_i32_110, %c0_i32_111] : memref<4x8x128xf32, #tpu.memory_space<vmem>> -> memref<1x1x128xf32, #tpu.memory_space<vmem>>
    %166 = tpu.memref_squeeze %165 : memref<1x1x128xf32, #tpu.memory_space<vmem>> -> memref<1x128xf32, #tpu.memory_space<vmem>>
    %167 = tpu.memref_slice %arg9[%c2_i32_108] : memref<4x!tpu.dma_semaphore, #tpu.memory_space<semaphore_mem>> -> memref<1x!tpu.dma_semaphore, #tpu.memory_space<semaphore_mem>>
    %168 = tpu.memref_squeeze %167 : memref<1x!tpu.dma_semaphore, #tpu.memory_space<semaphore_mem>> -> memref<!tpu.dma_semaphore, #tpu.memory_space<semaphore_mem>>
    tpu.enqueue_dma source(%164 : memref<1x128xf32, #tpu.memory_space<any>>) target(%166 : memref<1x128xf32, #tpu.memory_space<vmem>>) target_semaphore(%168 : memref<!tpu.dma_semaphore, #tpu.memory_space<semaphore_mem>>)
    %c2_i32_112 = arith.constant 2 : i32
    %c2_i32_113 = arith.constant 2 : i32
    %c0_i32_114 = arith.constant 0 : i32
    %169 = tpu.memref_slice %arg3[%143, %c0_i32_114] : memref<64x128xf32, #tpu.memory_space<any>> -> memref<1x128xf32, #tpu.memory_space<any>>
    %c2_i32_115 = arith.constant 2 : i32
    %c0_i32_116 = arith.constant 0 : i32
    %170 = tpu.memref_slice %arg8[%c2_i32_112, %c2_i32_115, %c0_i32_116] : memref<4x8x128xf32, #tpu.memory_space<vmem>> -> memref<1x1x128xf32, #tpu.memory_space<vmem>>
    %171 = tpu.memref_squeeze %170 : memref<1x1x128xf32, #tpu.memory_space<vmem>> -> memref<1x128xf32, #tpu.memory_space<vmem>>
    %172 = tpu.memref_slice %arg9[%c2_i32_113] : memref<4x!tpu.dma_semaphore, #tpu.memory_space<semaphore_mem>> -> memref<1x!tpu.dma_semaphore, #tpu.memory_space<semaphore_mem>>
    %173 = tpu.memref_squeeze %172 : memref<1x!tpu.dma_semaphore, #tpu.memory_space<semaphore_mem>> -> memref<!tpu.dma_semaphore, #tpu.memory_space<semaphore_mem>>
    tpu.enqueue_dma source(%169 : memref<1x128xf32, #tpu.memory_space<any>>) target(%171 : memref<1x128xf32, #tpu.memory_space<vmem>>) target_semaphore(%173 : memref<!tpu.dma_semaphore, #tpu.memory_space<semaphore_mem>>)
    %c2_i32_117 = arith.constant 2 : i32
    %c2_i32_118 = arith.constant 2 : i32
    %c0_i32_119 = arith.constant 0 : i32
    %174 = tpu.memref_slice %arg3[%146, %c0_i32_119] : memref<64x128xf32, #tpu.memory_space<any>> -> memref<1x128xf32, #tpu.memory_space<any>>
    %c3_i32_120 = arith.constant 3 : i32
    %c0_i32_121 = arith.constant 0 : i32
    %175 = tpu.memref_slice %arg8[%c2_i32_117, %c3_i32_120, %c0_i32_121] : memref<4x8x128xf32, #tpu.memory_space<vmem>> -> memref<1x1x128xf32, #tpu.memory_space<vmem>>
    %176 = tpu.memref_squeeze %175 : memref<1x1x128xf32, #tpu.memory_space<vmem>> -> memref<1x128xf32, #tpu.memory_space<vmem>>
    %177 = tpu.memref_slice %arg9[%c2_i32_118] : memref<4x!tpu.dma_semaphore, #tpu.memory_space<semaphore_mem>> -> memref<1x!tpu.dma_semaphore, #tpu.memory_space<semaphore_mem>>
    %178 = tpu.memref_squeeze %177 : memref<1x!tpu.dma_semaphore, #tpu.memory_space<semaphore_mem>> -> memref<!tpu.dma_semaphore, #tpu.memory_space<semaphore_mem>>
    tpu.enqueue_dma source(%174 : memref<1x128xf32, #tpu.memory_space<any>>) target(%176 : memref<1x128xf32, #tpu.memory_space<vmem>>) target_semaphore(%178 : memref<!tpu.dma_semaphore, #tpu.memory_space<semaphore_mem>>)
    %c2_i32_122 = arith.constant 2 : i32
    %c2_i32_123 = arith.constant 2 : i32
    %c0_i32_124 = arith.constant 0 : i32
    %179 = tpu.memref_slice %arg3[%149, %c0_i32_124] : memref<64x128xf32, #tpu.memory_space<any>> -> memref<1x128xf32, #tpu.memory_space<any>>
    %c4_i32_125 = arith.constant 4 : i32
    %c0_i32_126 = arith.constant 0 : i32
    %180 = tpu.memref_slice %arg8[%c2_i32_122, %c4_i32_125, %c0_i32_126] : memref<4x8x128xf32, #tpu.memory_space<vmem>> -> memref<1x1x128xf32, #tpu.memory_space<vmem>>
    %181 = tpu.memref_squeeze %180 : memref<1x1x128xf32, #tpu.memory_space<vmem>> -> memref<1x128xf32, #tpu.memory_space<vmem>>
    %182 = tpu.memref_slice %arg9[%c2_i32_123] : memref<4x!tpu.dma_semaphore, #tpu.memory_space<semaphore_mem>> -> memref<1x!tpu.dma_semaphore, #tpu.memory_space<semaphore_mem>>
    %183 = tpu.memref_squeeze %182 : memref<1x!tpu.dma_semaphore, #tpu.memory_space<semaphore_mem>> -> memref<!tpu.dma_semaphore, #tpu.memory_space<semaphore_mem>>
    tpu.enqueue_dma source(%179 : memref<1x128xf32, #tpu.memory_space<any>>) target(%181 : memref<1x128xf32, #tpu.memory_space<vmem>>) target_semaphore(%183 : memref<!tpu.dma_semaphore, #tpu.memory_space<semaphore_mem>>)
    %c2_i32_127 = arith.constant 2 : i32
    %c2_i32_128 = arith.constant 2 : i32
    %c0_i32_129 = arith.constant 0 : i32
    %184 = tpu.memref_slice %arg3[%152, %c0_i32_129] : memref<64x128xf32, #tpu.memory_space<any>> -> memref<1x128xf32, #tpu.memory_space<any>>
    %c5_i32_130 = arith.constant 5 : i32
    %c0_i32_131 = arith.constant 0 : i32
    %185 = tpu.memref_slice %arg8[%c2_i32_127, %c5_i32_130, %c0_i32_131] : memref<4x8x128xf32, #tpu.memory_space<vmem>> -> memref<1x1x128xf32, #tpu.memory_space<vmem>>
    %186 = tpu.memref_squeeze %185 : memref<1x1x128xf32, #tpu.memory_space<vmem>> -> memref<1x128xf32, #tpu.memory_space<vmem>>
    %187 = tpu.memref_slice %arg9[%c2_i32_128] : memref<4x!tpu.dma_semaphore, #tpu.memory_space<semaphore_mem>> -> memref<1x!tpu.dma_semaphore, #tpu.memory_space<semaphore_mem>>
    %188 = tpu.memref_squeeze %187 : memref<1x!tpu.dma_semaphore, #tpu.memory_space<semaphore_mem>> -> memref<!tpu.dma_semaphore, #tpu.memory_space<semaphore_mem>>
    tpu.enqueue_dma source(%184 : memref<1x128xf32, #tpu.memory_space<any>>) target(%186 : memref<1x128xf32, #tpu.memory_space<vmem>>) target_semaphore(%188 : memref<!tpu.dma_semaphore, #tpu.memory_space<semaphore_mem>>)
    %c2_i32_132 = arith.constant 2 : i32
    %c2_i32_133 = arith.constant 2 : i32
    %c0_i32_134 = arith.constant 0 : i32
    %189 = tpu.memref_slice %arg3[%155, %c0_i32_134] : memref<64x128xf32, #tpu.memory_space<any>> -> memref<1x128xf32, #tpu.memory_space<any>>
    %c6_i32_135 = arith.constant 6 : i32
    %c0_i32_136 = arith.constant 0 : i32
    %190 = tpu.memref_slice %arg8[%c2_i32_132, %c6_i32_135, %c0_i32_136] : memref<4x8x128xf32, #tpu.memory_space<vmem>> -> memref<1x1x128xf32, #tpu.memory_space<vmem>>
    %191 = tpu.memref_squeeze %190 : memref<1x1x128xf32, #tpu.memory_space<vmem>> -> memref<1x128xf32, #tpu.memory_space<vmem>>
    %192 = tpu.memref_slice %arg9[%c2_i32_133] : memref<4x!tpu.dma_semaphore, #tpu.memory_space<semaphore_mem>> -> memref<1x!tpu.dma_semaphore, #tpu.memory_space<semaphore_mem>>
    %193 = tpu.memref_squeeze %192 : memref<1x!tpu.dma_semaphore, #tpu.memory_space<semaphore_mem>> -> memref<!tpu.dma_semaphore, #tpu.memory_space<semaphore_mem>>
    tpu.enqueue_dma source(%189 : memref<1x128xf32, #tpu.memory_space<any>>) target(%191 : memref<1x128xf32, #tpu.memory_space<vmem>>) target_semaphore(%193 : memref<!tpu.dma_semaphore, #tpu.memory_space<semaphore_mem>>)
    %c2_i32_137 = arith.constant 2 : i32
    %c2_i32_138 = arith.constant 2 : i32
    %c0_i32_139 = arith.constant 0 : i32
    %194 = tpu.memref_slice %arg3[%158, %c0_i32_139] : memref<64x128xf32, #tpu.memory_space<any>> -> memref<1x128xf32, #tpu.memory_space<any>>
    %c7_i32_140 = arith.constant 7 : i32
    %c0_i32_141 = arith.constant 0 : i32
    %195 = tpu.memref_slice %arg8[%c2_i32_137, %c7_i32_140, %c0_i32_141] : memref<4x8x128xf32, #tpu.memory_space<vmem>> -> memref<1x1x128xf32, #tpu.memory_space<vmem>>
    %196 = tpu.memref_squeeze %195 : memref<1x1x128xf32, #tpu.memory_space<vmem>> -> memref<1x128xf32, #tpu.memory_space<vmem>>
    %197 = tpu.memref_slice %arg9[%c2_i32_138] : memref<4x!tpu.dma_semaphore, #tpu.memory_space<semaphore_mem>> -> memref<1x!tpu.dma_semaphore, #tpu.memory_space<semaphore_mem>>
    %198 = tpu.memref_squeeze %197 : memref<1x!tpu.dma_semaphore, #tpu.memory_space<semaphore_mem>> -> memref<!tpu.dma_semaphore, #tpu.memory_space<semaphore_mem>>
    tpu.enqueue_dma source(%194 : memref<1x128xf32, #tpu.memory_space<any>>) target(%196 : memref<1x128xf32, #tpu.memory_space<vmem>>) target_semaphore(%198 : memref<!tpu.dma_semaphore, #tpu.memory_space<semaphore_mem>>)
    %c3_i32_142 = arith.constant 3 : i32
    %199 = arith.addi %0, %c3_i32_142 : i32
    %c8_i32_143 = arith.constant 8 : i32
    %200 = arith.muli %199, %c8_i32_143 : i32
    %c0_i32_144 = arith.constant 0 : i32
    %201 = arith.addi %200, %c0_i32_144 : i32
    %202 = arith.index_cast %201 : i32 to index
    %203 = memref.load %arg1[%202] : memref<96xi32, #tpu.memory_space<smem>>
    %c1_i32_145 = arith.constant 1 : i32
    %204 = arith.addi %200, %c1_i32_145 : i32
    %205 = arith.index_cast %204 : i32 to index
    %206 = memref.load %arg1[%205] : memref<96xi32, #tpu.memory_space<smem>>
    %c2_i32_146 = arith.constant 2 : i32
    %207 = arith.addi %200, %c2_i32_146 : i32
    %208 = arith.index_cast %207 : i32 to index
    %209 = memref.load %arg1[%208] : memref<96xi32, #tpu.memory_space<smem>>
    %c3_i32_147 = arith.constant 3 : i32
    %210 = arith.addi %200, %c3_i32_147 : i32
    %211 = arith.index_cast %210 : i32 to index
    %212 = memref.load %arg1[%211] : memref<96xi32, #tpu.memory_space<smem>>
    %c4_i32_148 = arith.constant 4 : i32
    %213 = arith.addi %200, %c4_i32_148 : i32
    %214 = arith.index_cast %213 : i32 to index
    %215 = memref.load %arg1[%214] : memref<96xi32, #tpu.memory_space<smem>>
    %c5_i32_149 = arith.constant 5 : i32
    %216 = arith.addi %200, %c5_i32_149 : i32
    %217 = arith.index_cast %216 : i32 to index
    %218 = memref.load %arg1[%217] : memref<96xi32, #tpu.memory_space<smem>>
    %c6_i32_150 = arith.constant 6 : i32
    %219 = arith.addi %200, %c6_i32_150 : i32
    %220 = arith.index_cast %219 : i32 to index
    %221 = memref.load %arg1[%220] : memref<96xi32, #tpu.memory_space<smem>>
    %c7_i32_151 = arith.constant 7 : i32
    %222 = arith.addi %200, %c7_i32_151 : i32
    %223 = arith.index_cast %222 : i32 to index
    %224 = memref.load %arg1[%223] : memref<96xi32, #tpu.memory_space<smem>>
    %c3_i32_152 = arith.constant 3 : i32
    %c3_i32_153 = arith.constant 3 : i32
    %c0_i32_154 = arith.constant 0 : i32
    %225 = tpu.memref_slice %arg3[%203, %c0_i32_154] : memref<64x128xf32, #tpu.memory_space<any>> -> memref<1x128xf32, #tpu.memory_space<any>>
    %c0_i32_155 = arith.constant 0 : i32
    %c0_i32_156 = arith.constant 0 : i32
    %226 = tpu.memref_slice %arg8[%c3_i32_152, %c0_i32_155, %c0_i32_156] : memref<4x8x128xf32, #tpu.memory_space<vmem>> -> memref<1x1x128xf32, #tpu.memory_space<vmem>>
    %227 = tpu.memref_squeeze %226 : memref<1x1x128xf32, #tpu.memory_space<vmem>> -> memref<1x128xf32, #tpu.memory_space<vmem>>
    %228 = tpu.memref_slice %arg9[%c3_i32_153] : memref<4x!tpu.dma_semaphore, #tpu.memory_space<semaphore_mem>> -> memref<1x!tpu.dma_semaphore, #tpu.memory_space<semaphore_mem>>
    %229 = tpu.memref_squeeze %228 : memref<1x!tpu.dma_semaphore, #tpu.memory_space<semaphore_mem>> -> memref<!tpu.dma_semaphore, #tpu.memory_space<semaphore_mem>>
    tpu.enqueue_dma source(%225 : memref<1x128xf32, #tpu.memory_space<any>>) target(%227 : memref<1x128xf32, #tpu.memory_space<vmem>>) target_semaphore(%229 : memref<!tpu.dma_semaphore, #tpu.memory_space<semaphore_mem>>)
    %c3_i32_157 = arith.constant 3 : i32
    %c3_i32_158 = arith.constant 3 : i32
    %c0_i32_159 = arith.constant 0 : i32
    %230 = tpu.memref_slice %arg3[%206, %c0_i32_159] : memref<64x128xf32, #tpu.memory_space<any>> -> memref<1x128xf32, #tpu.memory_space<any>>
    %c1_i32_160 = arith.constant 1 : i32
    %c0_i32_161 = arith.constant 0 : i32
    %231 = tpu.memref_slice %arg8[%c3_i32_157, %c1_i32_160, %c0_i32_161] : memref<4x8x128xf32, #tpu.memory_space<vmem>> -> memref<1x1x128xf32, #tpu.memory_space<vmem>>
    %232 = tpu.memref_squeeze %231 : memref<1x1x128xf32, #tpu.memory_space<vmem>> -> memref<1x128xf32, #tpu.memory_space<vmem>>
    %233 = tpu.memref_slice %arg9[%c3_i32_158] : memref<4x!tpu.dma_semaphore, #tpu.memory_space<semaphore_mem>> -> memref<1x!tpu.dma_semaphore, #tpu.memory_space<semaphore_mem>>
    %234 = tpu.memref_squeeze %233 : memref<1x!tpu.dma_semaphore, #tpu.memory_space<semaphore_mem>> -> memref<!tpu.dma_semaphore, #tpu.memory_space<semaphore_mem>>
    tpu.enqueue_dma source(%230 : memref<1x128xf32, #tpu.memory_space<any>>) target(%232 : memref<1x128xf32, #tpu.memory_space<vmem>>) target_semaphore(%234 : memref<!tpu.dma_semaphore, #tpu.memory_space<semaphore_mem>>)
    %c3_i32_162 = arith.constant 3 : i32
    %c3_i32_163 = arith.constant 3 : i32
    %c0_i32_164 = arith.constant 0 : i32
    %235 = tpu.memref_slice %arg3[%209, %c0_i32_164] : memref<64x128xf32, #tpu.memory_space<any>> -> memref<1x128xf32, #tpu.memory_space<any>>
    %c2_i32_165 = arith.constant 2 : i32
    %c0_i32_166 = arith.constant 0 : i32
    %236 = tpu.memref_slice %arg8[%c3_i32_162, %c2_i32_165, %c0_i32_166] : memref<4x8x128xf32, #tpu.memory_space<vmem>> -> memref<1x1x128xf32, #tpu.memory_space<vmem>>
    %237 = tpu.memref_squeeze %236 : memref<1x1x128xf32, #tpu.memory_space<vmem>> -> memref<1x128xf32, #tpu.memory_space<vmem>>
    %238 = tpu.memref_slice %arg9[%c3_i32_163] : memref<4x!tpu.dma_semaphore, #tpu.memory_space<semaphore_mem>> -> memref<1x!tpu.dma_semaphore, #tpu.memory_space<semaphore_mem>>
    %239 = tpu.memref_squeeze %238 : memref<1x!tpu.dma_semaphore, #tpu.memory_space<semaphore_mem>> -> memref<!tpu.dma_semaphore, #tpu.memory_space<semaphore_mem>>
    tpu.enqueue_dma source(%235 : memref<1x128xf32, #tpu.memory_space<any>>) target(%237 : memref<1x128xf32, #tpu.memory_space<vmem>>) target_semaphore(%239 : memref<!tpu.dma_semaphore, #tpu.memory_space<semaphore_mem>>)
    %c3_i32_167 = arith.constant 3 : i32
    %c3_i32_168 = arith.constant 3 : i32
    %c0_i32_169 = arith.constant 0 : i32
    %240 = tpu.memref_slice %arg3[%212, %c0_i32_169] : memref<64x128xf32, #tpu.memory_space<any>> -> memref<1x128xf32, #tpu.memory_space<any>>
    %c3_i32_170 = arith.constant 3 : i32
    %c0_i32_171 = arith.constant 0 : i32
    %241 = tpu.memref_slice %arg8[%c3_i32_167, %c3_i32_170, %c0_i32_171] : memref<4x8x128xf32, #tpu.memory_space<vmem>> -> memref<1x1x128xf32, #tpu.memory_space<vmem>>
    %242 = tpu.memref_squeeze %241 : memref<1x1x128xf32, #tpu.memory_space<vmem>> -> memref<1x128xf32, #tpu.memory_space<vmem>>
    %243 = tpu.memref_slice %arg9[%c3_i32_168] : memref<4x!tpu.dma_semaphore, #tpu.memory_space<semaphore_mem>> -> memref<1x!tpu.dma_semaphore, #tpu.memory_space<semaphore_mem>>
    %244 = tpu.memref_squeeze %243 : memref<1x!tpu.dma_semaphore, #tpu.memory_space<semaphore_mem>> -> memref<!tpu.dma_semaphore, #tpu.memory_space<semaphore_mem>>
    tpu.enqueue_dma source(%240 : memref<1x128xf32, #tpu.memory_space<any>>) target(%242 : memref<1x128xf32, #tpu.memory_space<vmem>>) target_semaphore(%244 : memref<!tpu.dma_semaphore, #tpu.memory_space<semaphore_mem>>)
    %c3_i32_172 = arith.constant 3 : i32
    %c3_i32_173 = arith.constant 3 : i32
    %c0_i32_174 = arith.constant 0 : i32
    %245 = tpu.memref_slice %arg3[%215, %c0_i32_174] : memref<64x128xf32, #tpu.memory_space<any>> -> memref<1x128xf32, #tpu.memory_space<any>>
    %c4_i32_175 = arith.constant 4 : i32
    %c0_i32_176 = arith.constant 0 : i32
    %246 = tpu.memref_slice %arg8[%c3_i32_172, %c4_i32_175, %c0_i32_176] : memref<4x8x128xf32, #tpu.memory_space<vmem>> -> memref<1x1x128xf32, #tpu.memory_space<vmem>>
    %247 = tpu.memref_squeeze %246 : memref<1x1x128xf32, #tpu.memory_space<vmem>> -> memref<1x128xf32, #tpu.memory_space<vmem>>
    %248 = tpu.memref_slice %arg9[%c3_i32_173] : memref<4x!tpu.dma_semaphore, #tpu.memory_space<semaphore_mem>> -> memref<1x!tpu.dma_semaphore, #tpu.memory_space<semaphore_mem>>
    %249 = tpu.memref_squeeze %248 : memref<1x!tpu.dma_semaphore, #tpu.memory_space<semaphore_mem>> -> memref<!tpu.dma_semaphore, #tpu.memory_space<semaphore_mem>>
    tpu.enqueue_dma source(%245 : memref<1x128xf32, #tpu.memory_space<any>>) target(%247 : memref<1x128xf32, #tpu.memory_space<vmem>>) target_semaphore(%249 : memref<!tpu.dma_semaphore, #tpu.memory_space<semaphore_mem>>)
    %c3_i32_177 = arith.constant 3 : i32
    %c3_i32_178 = arith.constant 3 : i32
    %c0_i32_179 = arith.constant 0 : i32
    %250 = tpu.memref_slice %arg3[%218, %c0_i32_179] : memref<64x128xf32, #tpu.memory_space<any>> -> memref<1x128xf32, #tpu.memory_space<any>>
    %c5_i32_180 = arith.constant 5 : i32
    %c0_i32_181 = arith.constant 0 : i32
    %251 = tpu.memref_slice %arg8[%c3_i32_177, %c5_i32_180, %c0_i32_181] : memref<4x8x128xf32, #tpu.memory_space<vmem>> -> memref<1x1x128xf32, #tpu.memory_space<vmem>>
    %252 = tpu.memref_squeeze %251 : memref<1x1x128xf32, #tpu.memory_space<vmem>> -> memref<1x128xf32, #tpu.memory_space<vmem>>
    %253 = tpu.memref_slice %arg9[%c3_i32_178] : memref<4x!tpu.dma_semaphore, #tpu.memory_space<semaphore_mem>> -> memref<1x!tpu.dma_semaphore, #tpu.memory_space<semaphore_mem>>
    %254 = tpu.memref_squeeze %253 : memref<1x!tpu.dma_semaphore, #tpu.memory_space<semaphore_mem>> -> memref<!tpu.dma_semaphore, #tpu.memory_space<semaphore_mem>>
    tpu.enqueue_dma source(%250 : memref<1x128xf32, #tpu.memory_space<any>>) target(%252 : memref<1x128xf32, #tpu.memory_space<vmem>>) target_semaphore(%254 : memref<!tpu.dma_semaphore, #tpu.memory_space<semaphore_mem>>)
    %c3_i32_182 = arith.constant 3 : i32
    %c3_i32_183 = arith.constant 3 : i32
    %c0_i32_184 = arith.constant 0 : i32
    %255 = tpu.memref_slice %arg3[%221, %c0_i32_184] : memref<64x128xf32, #tpu.memory_space<any>> -> memref<1x128xf32, #tpu.memory_space<any>>
    %c6_i32_185 = arith.constant 6 : i32
    %c0_i32_186 = arith.constant 0 : i32
    %256 = tpu.memref_slice %arg8[%c3_i32_182, %c6_i32_185, %c0_i32_186] : memref<4x8x128xf32, #tpu.memory_space<vmem>> -> memref<1x1x128xf32, #tpu.memory_space<vmem>>
    %257 = tpu.memref_squeeze %256 : memref<1x1x128xf32, #tpu.memory_space<vmem>> -> memref<1x128xf32, #tpu.memory_space<vmem>>
    %258 = tpu.memref_slice %arg9[%c3_i32_183] : memref<4x!tpu.dma_semaphore, #tpu.memory_space<semaphore_mem>> -> memref<1x!tpu.dma_semaphore, #tpu.memory_space<semaphore_mem>>
    %259 = tpu.memref_squeeze %258 : memref<1x!tpu.dma_semaphore, #tpu.memory_space<semaphore_mem>> -> memref<!tpu.dma_semaphore, #tpu.memory_space<semaphore_mem>>
    tpu.enqueue_dma source(%255 : memref<1x128xf32, #tpu.memory_space<any>>) target(%257 : memref<1x128xf32, #tpu.memory_space<vmem>>) target_semaphore(%259 : memref<!tpu.dma_semaphore, #tpu.memory_space<semaphore_mem>>)
    %c3_i32_187 = arith.constant 3 : i32
    %c3_i32_188 = arith.constant 3 : i32
    %c0_i32_189 = arith.constant 0 : i32
    %260 = tpu.memref_slice %arg3[%224, %c0_i32_189] : memref<64x128xf32, #tpu.memory_space<any>> -> memref<1x128xf32, #tpu.memory_space<any>>
    %c7_i32_190 = arith.constant 7 : i32
    %c0_i32_191 = arith.constant 0 : i32
    %261 = tpu.memref_slice %arg8[%c3_i32_187, %c7_i32_190, %c0_i32_191] : memref<4x8x128xf32, #tpu.memory_space<vmem>> -> memref<1x1x128xf32, #tpu.memory_space<vmem>>
    %262 = tpu.memref_squeeze %261 : memref<1x1x128xf32, #tpu.memory_space<vmem>> -> memref<1x128xf32, #tpu.memory_space<vmem>>
    %263 = tpu.memref_slice %arg9[%c3_i32_188] : memref<4x!tpu.dma_semaphore, #tpu.memory_space<semaphore_mem>> -> memref<1x!tpu.dma_semaphore, #tpu.memory_space<semaphore_mem>>
    %264 = tpu.memref_squeeze %263 : memref<1x!tpu.dma_semaphore, #tpu.memory_space<semaphore_mem>> -> memref<!tpu.dma_semaphore, #tpu.memory_space<semaphore_mem>>
    tpu.enqueue_dma source(%260 : memref<1x128xf32, #tpu.memory_space<any>>) target(%262 : memref<1x128xf32, #tpu.memory_space<vmem>>) target_semaphore(%264 : memref<!tpu.dma_semaphore, #tpu.memory_space<semaphore_mem>>)
    %265 = tpu.iota {dimensions = array<i32: 0>} : vector<8x1xi32>
    %c0_i32_192 = arith.constant 0 : i32
    %c8_i32_193 = arith.constant 8 : i32
    %266 = arith.addi %c0_i32_192, %c8_i32_193 : i32
    %c1_i32_194 = arith.constant 1 : i32
    scf.for %arg10 = %c0_i32_192 to %266 step %c1_i32_194  : i32 {
      %c1_i32_203 = arith.constant 1 : i32
      %274 = arith.muli %arg10, %c1_i32_203 : i32
      %c0_i32_204 = arith.constant 0 : i32
      %275 = arith.addi %c0_i32_204, %274 : i32
      %c3_i32_205 = arith.constant 3 : i32
      %276 = arith.andi %275, %c3_i32_205 : i32
      %277 = arith.addi %0, %275 : i32
      %278 = arith.index_cast %277 : i32 to index
      %279 = memref.load %arg2[%278] : memref<8xi32, #tpu.memory_space<smem>>
      %c8_i32_206 = arith.constant 8 : i32
      %280 = arith.minsi %279, %c8_i32_206 : i32
      %c4_i32_207 = arith.constant 4 : i32
      %281 = arith.addi %277, %c4_i32_207 : i32
      %c8_i32_208 = arith.constant 8 : i32
      %282 = arith.muli %281, %c8_i32_208 : i32
      %c0_i32_209 = arith.constant 0 : i32
      %283 = arith.addi %282, %c0_i32_209 : i32
      %284 = arith.index_cast %283 : i32 to index
      %285 = memref.load %arg1[%284] : memref<96xi32, #tpu.memory_space<smem>>
      %c1_i32_210 = arith.constant 1 : i32
      %286 = arith.addi %282, %c1_i32_210 : i32
      %287 = arith.index_cast %286 : i32 to index
      %288 = memref.load %arg1[%287] : memref<96xi32, #tpu.memory_space<smem>>
      %c2_i32_211 = arith.constant 2 : i32
      %289 = arith.addi %282, %c2_i32_211 : i32
      %290 = arith.index_cast %289 : i32 to index
      %291 = memref.load %arg1[%290] : memref<96xi32, #tpu.memory_space<smem>>
      %c3_i32_212 = arith.constant 3 : i32
      %292 = arith.addi %282, %c3_i32_212 : i32
      %293 = arith.index_cast %292 : i32 to index
      %294 = memref.load %arg1[%293] : memref<96xi32, #tpu.memory_space<smem>>
      %c4_i32_213 = arith.constant 4 : i32
      %295 = arith.addi %282, %c4_i32_213 : i32
      %296 = arith.index_cast %295 : i32 to index
      %297 = memref.load %arg1[%296] : memref<96xi32, #tpu.memory_space<smem>>
      %c5_i32_214 = arith.constant 5 : i32
      %298 = arith.addi %282, %c5_i32_214 : i32
      %299 = arith.index_cast %298 : i32 to index
      %300 = memref.load %arg1[%299] : memref<96xi32, #tpu.memory_space<smem>>
      %c6_i32_215 = arith.constant 6 : i32
      %301 = arith.addi %282, %c6_i32_215 : i32
      %302 = arith.index_cast %301 : i32 to index
      %303 = memref.load %arg1[%302] : memref<96xi32, #tpu.memory_space<smem>>
      %c7_i32_216 = arith.constant 7 : i32
      %304 = arith.addi %282, %c7_i32_216 : i32
      %305 = arith.index_cast %304 : i32 to index
      %306 = memref.load %arg1[%305] : memref<96xi32, #tpu.memory_space<smem>>
      %c0_i32_217 = arith.constant 0 : i32
      %c0_i32_218 = arith.constant 0 : i32
      %307 = tpu.memref_slice %arg3[%c0_i32_217, %c0_i32_218] : memref<64x128xf32, #tpu.memory_space<any>> -> memref<8x128xf32, #tpu.memory_space<any>>
      %c0_i32_219 = arith.constant 0 : i32
      %c0_i32_220 = arith.constant 0 : i32
      %308 = tpu.memref_slice %arg8[%276, %c0_i32_219, %c0_i32_220] : memref<4x8x128xf32, #tpu.memory_space<vmem>> -> memref<1x8x128xf32, #tpu.memory_space<vmem>>
      %309 = tpu.memref_squeeze %308 : memref<1x8x128xf32, #tpu.memory_space<vmem>> -> memref<8x128xf32, #tpu.memory_space<vmem>>
      %310 = tpu.memref_slice %arg9[%276] : memref<4x!tpu.dma_semaphore, #tpu.memory_space<semaphore_mem>> -> memref<1x!tpu.dma_semaphore, #tpu.memory_space<semaphore_mem>>
      %311 = tpu.memref_squeeze %310 : memref<1x!tpu.dma_semaphore, #tpu.memory_space<semaphore_mem>> -> memref<!tpu.dma_semaphore, #tpu.memory_space<semaphore_mem>>
      tpu.wait_dma2 semaphore(%311 : memref<!tpu.dma_semaphore, #tpu.memory_space<semaphore_mem>>) src(%307 : memref<8x128xf32, #tpu.memory_space<any>>) dst(%309 : memref<8x128xf32, #tpu.memory_space<vmem>>)
      %312 = arith.index_cast %276 : i32 to index
      %c0_221 = arith.constant 0 : index
      %c0_222 = arith.constant 0 : index
      %313 = vector.load %arg8[%312, %c0_221, %c0_222] : memref<4x8x128xf32, #tpu.memory_space<vmem>>, vector<1x8x128xf32>
      %314 = vector.shape_cast %313 : vector<1x8x128xf32> to vector<8x128xf32>
      %c4_i32_223 = arith.constant 4 : i32
      %315 = arith.addi %275, %c4_i32_223 : i32
      %c8_i32_224 = arith.constant 8 : i32
      %316 = arith.cmpi slt, %315, %c8_i32_224 : i32
      %317 = arith.extui %316 : i1 to i32
      %c0_i32_225 = arith.constant 0 : i32
      %318 = arith.cmpi ne, %317, %c0_i32_225 : i32
      scf.if %318 {
        %c0_i32_231 = arith.constant 0 : i32
        %334 = tpu.memref_slice %arg3[%285, %c0_i32_231] : memref<64x128xf32, #tpu.memory_space<any>> -> memref<1x128xf32, #tpu.memory_space<any>>
        %c0_i32_232 = arith.constant 0 : i32
        %c0_i32_233 = arith.constant 0 : i32
        %335 = tpu.memref_slice %arg8[%276, %c0_i32_232, %c0_i32_233] : memref<4x8x128xf32, #tpu.memory_space<vmem>> -> memref<1x1x128xf32, #tpu.memory_space<vmem>>
        %336 = tpu.memref_squeeze %335 : memref<1x1x128xf32, #tpu.memory_space<vmem>> -> memref<1x128xf32, #tpu.memory_space<vmem>>
        %337 = tpu.memref_slice %arg9[%276] : memref<4x!tpu.dma_semaphore, #tpu.memory_space<semaphore_mem>> -> memref<1x!tpu.dma_semaphore, #tpu.memory_space<semaphore_mem>>
        %338 = tpu.memref_squeeze %337 : memref<1x!tpu.dma_semaphore, #tpu.memory_space<semaphore_mem>> -> memref<!tpu.dma_semaphore, #tpu.memory_space<semaphore_mem>>
        tpu.enqueue_dma source(%334 : memref<1x128xf32, #tpu.memory_space<any>>) target(%336 : memref<1x128xf32, #tpu.memory_space<vmem>>) target_semaphore(%338 : memref<!tpu.dma_semaphore, #tpu.memory_space<semaphore_mem>>)
        %c0_i32_234 = arith.constant 0 : i32
        %339 = tpu.memref_slice %arg3[%288, %c0_i32_234] : memref<64x128xf32, #tpu.memory_space<any>> -> memref<1x128xf32, #tpu.memory_space<any>>
        %c1_i32_235 = arith.constant 1 : i32
        %c0_i32_236 = arith.constant 0 : i32
        %340 = tpu.memref_slice %arg8[%276, %c1_i32_235, %c0_i32_236] : memref<4x8x128xf32, #tpu.memory_space<vmem>> -> memref<1x1x128xf32, #tpu.memory_space<vmem>>
        %341 = tpu.memref_squeeze %340 : memref<1x1x128xf32, #tpu.memory_space<vmem>> -> memref<1x128xf32, #tpu.memory_space<vmem>>
        %342 = tpu.memref_slice %arg9[%276] : memref<4x!tpu.dma_semaphore, #tpu.memory_space<semaphore_mem>> -> memref<1x!tpu.dma_semaphore, #tpu.memory_space<semaphore_mem>>
        %343 = tpu.memref_squeeze %342 : memref<1x!tpu.dma_semaphore, #tpu.memory_space<semaphore_mem>> -> memref<!tpu.dma_semaphore, #tpu.memory_space<semaphore_mem>>
        tpu.enqueue_dma source(%339 : memref<1x128xf32, #tpu.memory_space<any>>) target(%341 : memref<1x128xf32, #tpu.memory_space<vmem>>) target_semaphore(%343 : memref<!tpu.dma_semaphore, #tpu.memory_space<semaphore_mem>>)
        %c0_i32_237 = arith.constant 0 : i32
        %344 = tpu.memref_slice %arg3[%291, %c0_i32_237] : memref<64x128xf32, #tpu.memory_space<any>> -> memref<1x128xf32, #tpu.memory_space<any>>
        %c2_i32_238 = arith.constant 2 : i32
        %c0_i32_239 = arith.constant 0 : i32
        %345 = tpu.memref_slice %arg8[%276, %c2_i32_238, %c0_i32_239] : memref<4x8x128xf32, #tpu.memory_space<vmem>> -> memref<1x1x128xf32, #tpu.memory_space<vmem>>
        %346 = tpu.memref_squeeze %345 : memref<1x1x128xf32, #tpu.memory_space<vmem>> -> memref<1x128xf32, #tpu.memory_space<vmem>>
        %347 = tpu.memref_slice %arg9[%276] : memref<4x!tpu.dma_semaphore, #tpu.memory_space<semaphore_mem>> -> memref<1x!tpu.dma_semaphore, #tpu.memory_space<semaphore_mem>>
        %348 = tpu.memref_squeeze %347 : memref<1x!tpu.dma_semaphore, #tpu.memory_space<semaphore_mem>> -> memref<!tpu.dma_semaphore, #tpu.memory_space<semaphore_mem>>
        tpu.enqueue_dma source(%344 : memref<1x128xf32, #tpu.memory_space<any>>) target(%346 : memref<1x128xf32, #tpu.memory_space<vmem>>) target_semaphore(%348 : memref<!tpu.dma_semaphore, #tpu.memory_space<semaphore_mem>>)
        %c0_i32_240 = arith.constant 0 : i32
        %349 = tpu.memref_slice %arg3[%294, %c0_i32_240] : memref<64x128xf32, #tpu.memory_space<any>> -> memref<1x128xf32, #tpu.memory_space<any>>
        %c3_i32_241 = arith.constant 3 : i32
        %c0_i32_242 = arith.constant 0 : i32
        %350 = tpu.memref_slice %arg8[%276, %c3_i32_241, %c0_i32_242] : memref<4x8x128xf32, #tpu.memory_space<vmem>> -> memref<1x1x128xf32, #tpu.memory_space<vmem>>
        %351 = tpu.memref_squeeze %350 : memref<1x1x128xf32, #tpu.memory_space<vmem>> -> memref<1x128xf32, #tpu.memory_space<vmem>>
        %352 = tpu.memref_slice %arg9[%276] : memref<4x!tpu.dma_semaphore, #tpu.memory_space<semaphore_mem>> -> memref<1x!tpu.dma_semaphore, #tpu.memory_space<semaphore_mem>>
        %353 = tpu.memref_squeeze %352 : memref<1x!tpu.dma_semaphore, #tpu.memory_space<semaphore_mem>> -> memref<!tpu.dma_semaphore, #tpu.memory_space<semaphore_mem>>
        tpu.enqueue_dma source(%349 : memref<1x128xf32, #tpu.memory_space<any>>) target(%351 : memref<1x128xf32, #tpu.memory_space<vmem>>) target_semaphore(%353 : memref<!tpu.dma_semaphore, #tpu.memory_space<semaphore_mem>>)
        %c0_i32_243 = arith.constant 0 : i32
        %354 = tpu.memref_slice %arg3[%297, %c0_i32_243] : memref<64x128xf32, #tpu.memory_space<any>> -> memref<1x128xf32, #tpu.memory_space<any>>
        %c4_i32_244 = arith.constant 4 : i32
        %c0_i32_245 = arith.constant 0 : i32
        %355 = tpu.memref_slice %arg8[%276, %c4_i32_244, %c0_i32_245] : memref<4x8x128xf32, #tpu.memory_space<vmem>> -> memref<1x1x128xf32, #tpu.memory_space<vmem>>
        %356 = tpu.memref_squeeze %355 : memref<1x1x128xf32, #tpu.memory_space<vmem>> -> memref<1x128xf32, #tpu.memory_space<vmem>>
        %357 = tpu.memref_slice %arg9[%276] : memref<4x!tpu.dma_semaphore, #tpu.memory_space<semaphore_mem>> -> memref<1x!tpu.dma_semaphore, #tpu.memory_space<semaphore_mem>>
        %358 = tpu.memref_squeeze %357 : memref<1x!tpu.dma_semaphore, #tpu.memory_space<semaphore_mem>> -> memref<!tpu.dma_semaphore, #tpu.memory_space<semaphore_mem>>
        tpu.enqueue_dma source(%354 : memref<1x128xf32, #tpu.memory_space<any>>) target(%356 : memref<1x128xf32, #tpu.memory_space<vmem>>) target_semaphore(%358 : memref<!tpu.dma_semaphore, #tpu.memory_space<semaphore_mem>>)
        %c0_i32_246 = arith.constant 0 : i32
        %359 = tpu.memref_slice %arg3[%300, %c0_i32_246] : memref<64x128xf32, #tpu.memory_space<any>> -> memref<1x128xf32, #tpu.memory_space<any>>
        %c5_i32_247 = arith.constant 5 : i32
        %c0_i32_248 = arith.constant 0 : i32
        %360 = tpu.memref_slice %arg8[%276, %c5_i32_247, %c0_i32_248] : memref<4x8x128xf32, #tpu.memory_space<vmem>> -> memref<1x1x128xf32, #tpu.memory_space<vmem>>
        %361 = tpu.memref_squeeze %360 : memref<1x1x128xf32, #tpu.memory_space<vmem>> -> memref<1x128xf32, #tpu.memory_space<vmem>>
        %362 = tpu.memref_slice %arg9[%276] : memref<4x!tpu.dma_semaphore, #tpu.memory_space<semaphore_mem>> -> memref<1x!tpu.dma_semaphore, #tpu.memory_space<semaphore_mem>>
        %363 = tpu.memref_squeeze %362 : memref<1x!tpu.dma_semaphore, #tpu.memory_space<semaphore_mem>> -> memref<!tpu.dma_semaphore, #tpu.memory_space<semaphore_mem>>
        tpu.enqueue_dma source(%359 : memref<1x128xf32, #tpu.memory_space<any>>) target(%361 : memref<1x128xf32, #tpu.memory_space<vmem>>) target_semaphore(%363 : memref<!tpu.dma_semaphore, #tpu.memory_space<semaphore_mem>>)
        %c0_i32_249 = arith.constant 0 : i32
        %364 = tpu.memref_slice %arg3[%303, %c0_i32_249] : memref<64x128xf32, #tpu.memory_space<any>> -> memref<1x128xf32, #tpu.memory_space<any>>
        %c6_i32_250 = arith.constant 6 : i32
        %c0_i32_251 = arith.constant 0 : i32
        %365 = tpu.memref_slice %arg8[%276, %c6_i32_250, %c0_i32_251] : memref<4x8x128xf32, #tpu.memory_space<vmem>> -> memref<1x1x128xf32, #tpu.memory_space<vmem>>
        %366 = tpu.memref_squeeze %365 : memref<1x1x128xf32, #tpu.memory_space<vmem>> -> memref<1x128xf32, #tpu.memory_space<vmem>>
        %367 = tpu.memref_slice %arg9[%276] : memref<4x!tpu.dma_semaphore, #tpu.memory_space<semaphore_mem>> -> memref<1x!tpu.dma_semaphore, #tpu.memory_space<semaphore_mem>>
        %368 = tpu.memref_squeeze %367 : memref<1x!tpu.dma_semaphore, #tpu.memory_space<semaphore_mem>> -> memref<!tpu.dma_semaphore, #tpu.memory_space<semaphore_mem>>
        tpu.enqueue_dma source(%364 : memref<1x128xf32, #tpu.memory_space<any>>) target(%366 : memref<1x128xf32, #tpu.memory_space<vmem>>) target_semaphore(%368 : memref<!tpu.dma_semaphore, #tpu.memory_space<semaphore_mem>>)
        %c0_i32_252 = arith.constant 0 : i32
        %369 = tpu.memref_slice %arg3[%306, %c0_i32_252] : memref<64x128xf32, #tpu.memory_space<any>> -> memref<1x128xf32, #tpu.memory_space<any>>
        %c7_i32_253 = arith.constant 7 : i32
        %c0_i32_254 = arith.constant 0 : i32
        %370 = tpu.memref_slice %arg8[%276, %c7_i32_253, %c0_i32_254] : memref<4x8x128xf32, #tpu.memory_space<vmem>> -> memref<1x1x128xf32, #tpu.memory_space<vmem>>
        %371 = tpu.memref_squeeze %370 : memref<1x1x128xf32, #tpu.memory_space<vmem>> -> memref<1x128xf32, #tpu.memory_space<vmem>>
        %372 = tpu.memref_slice %arg9[%276] : memref<4x!tpu.dma_semaphore, #tpu.memory_space<semaphore_mem>> -> memref<1x!tpu.dma_semaphore, #tpu.memory_space<semaphore_mem>>
        %373 = tpu.memref_squeeze %372 : memref<1x!tpu.dma_semaphore, #tpu.memory_space<semaphore_mem>> -> memref<!tpu.dma_semaphore, #tpu.memory_space<semaphore_mem>>
        tpu.enqueue_dma source(%369 : memref<1x128xf32, #tpu.memory_space<any>>) target(%371 : memref<1x128xf32, #tpu.memory_space<vmem>>) target_semaphore(%373 : memref<!tpu.dma_semaphore, #tpu.memory_space<semaphore_mem>>)
      } else {
      }
      %c1_i32_226 = arith.constant 1 : i32
      %319 = arith.maxsi %280, %c1_i32_226 : i32
      %320 = arith.sitofp %319 : i32 to f32
      %cst_227 = arith.constant 1.000000e+00 : f32
      %321 = arith.divf %cst_227, %320 : f32
      %322 = vector.broadcast %280 : i32 to vector<8x1xi32>
      %323 = arith.cmpi slt, %265, %322 : vector<8x1xi32>
      %cst_228 = arith.constant 0.000000e+00 : f32
      %324 = vector.shape_cast %323 : vector<8x1xi1> to vector<8x1xi1>
      %325 = vector.broadcast %324 : vector<8x1xi1> to vector<8x128xi1>
      %326 = vector.broadcast %cst_228 : f32 to vector<8x128xf32>
      %327 = arith.select %325, %314, %326 : vector<8x128xi1>, vector<8x128xf32>
      %cst_229 = arith.constant dense<0.000000e+00> : vector<128xf32>
      %328 = vector.multi_reduction <add>, %327, %cst_229 [0] : vector<8x128xf32> to vector<128xf32>
      %329 = vector.shape_cast %328 : vector<128xf32> to vector<1x128xf32>
      %330 = vector.broadcast %321 : f32 to vector<1x128xf32>
      %331 = arith.mulf %329, %330 : vector<1x128xf32>
      %332 = arith.index_cast %275 : i32 to index
      %c0_230 = arith.constant 0 : index
      %333 = vector.load %arg7[%332, %c0_230] : memref<8x128xf32, #tpu.memory_space<vmem>>, vector<1x128xf32>
      tpu.vector_store %arg7[%332, %c0_230], %331 {strides = array<i32>} : memref<8x128xf32, #tpu.memory_space<vmem>>, vector<1x128xf32>,
    }
    %c8_i32_195 = arith.constant 8 : i32
    %c0 = arith.constant 0 : index
    %c0_196 = arith.constant 0 : index
    %267 = vector.load %arg7[%c0, %c0_196] : memref<8x128xf32, #tpu.memory_space<vmem>>, vector<8x128xf32>
    %c0_197 = arith.constant 0 : index
    %c0_198 = arith.constant 0 : index
    %268 = vector.load %arg4[%c0_197, %c0_198] : memref<128x128xf32, #tpu.memory_space<vmem>>, vector<128x128xf32>
    %cst = arith.constant dense<0.000000e+00> : vector<8x128xf32>
    %269 = tpu.matmul %267, %268, %cst {dimension_numbers = #tpu.dot_dimension_numbers<[1], [0], [0], [1], [0, 0, 1, 1], [], []>} : vector<8x128xf32>, vector<128x128xf32>, vector<8x128xf32> -> vector<8x128xf32>
    %c0_199 = arith.constant 0 : index
    %c0_200 = arith.constant 0 : index
    %270 = vector.load %arg5[%c0_199, %c0_200] : memref<1x128xf32, #tpu.memory_space<vmem>>, vector<1x128xf32>
    %271 = vector.broadcast %270 : vector<1x128xf32> to vector<8x128xf32>
    %272 = arith.addf %269, %271 : vector<8x128xf32>
    %c0_201 = arith.constant 0 : index
    %c0_202 = arith.constant 0 : index
    %273 = vector.load %arg6[%c0_201, %c0_202] : memref<8x128xf32, #tpu.memory_space<vmem>>, vector<8x128xf32>
    tpu.vector_store %arg6[%c0_201, %c0_202], %272 {strides = array<i32>} : memref<8x128xf32, #tpu.memory_space<vmem>>, vector<8x128xf32>,
    return
  }
  func.func @transform_1(%arg0: i32, %arg1: memref<96xi32, #tpu.memory_space<smem>>, %arg2: memref<8xi32, #tpu.memory_space<smem>>) -> (i32, i32) {
    %c0_i32 = arith.constant 0 : i32
    %c0_i32_0 = arith.constant 0 : i32
    %c0_i32_1 = arith.constant 0 : i32
    return %c0_i32, %c0_i32_0 : i32, i32
  }
  func.func @transform_2(%arg0: i32, %arg1: memref<96xi32, #tpu.memory_space<smem>>, %arg2: memref<8xi32, #tpu.memory_space<smem>>) -> (i32, i32) {
    %c0_i32 = arith.constant 0 : i32
    %c0_i32_0 = arith.constant 0 : i32
    %c0_i32_1 = arith.constant 0 : i32
    return %c0_i32, %c0_i32_0 : i32, i32
  }
  func.func @transform_3(%arg0: i32, %arg1: memref<96xi32, #tpu.memory_space<smem>>, %arg2: memref<8xi32, #tpu.memory_space<smem>>) -> (i32, i32) {
    %c0_i32 = arith.constant 0 : i32
    %c0_i32_0 = arith.constant 0 : i32
    return %arg0, %c0_i32 : i32, i32
  }
}

</mosaic_0001>

<bundles_post_ra>
// kernel: tpu_custom_call.1
= control target key start
LH: loop header
LB: loop body
LE: loop exit
PB: predicated region body
PF: predicated region fallthrough
CT: control target
= control target key end

     0   :  { %s2147_s24 = smov [#allocation6]   ;;  %s2148_s25 = smov [#allocation7]   ;;  %s2745_s0 = inlined_call_operand.hbm [shape: s32[96], index: 0, kind: input, shape index: {}]   ;;  %s2746_s2 = inlined_call_operand.hbm [shape: f32[64,128], index: 2, kind: input, shape index: {}]   ;;  %s2747_s3 = inlined_call_operand.hbm [shape: f32[128,128], index: 3, kind: input, shape index: {}]   ;;  %s2748_s4 = inlined_call_operand.vmem [shape: f32[1,128], index: 4, kind: input, shape index: {}]   ;;  %s2749_s5 = inlined_call_operand.hbm [shape: f32[8,128], index: 5, kind: output, shape index: {}]   ;;  %s2750_s1 = inlined_call_operand.hbm [shape: s32[8], index: 1, kind: input, shape index: {}]  }
   0x1   :  { %s11_s20 = sshll.u32 %s2745_s0, 4  ;;  %s16_s23 = sshll.u32 %s2750_s1, 4  ;;  %s12_s20 = int_to_ptr.hbm [resolvable:$true] %s11_s20  ;;  %s17_s23 = int_to_ptr.hbm [resolvable:$true] %s16_s23 }
   0x2   :  { %14 = dma.hbm_to_smem %s12_s20, 16, %s2147_s24, [#allocation5] }
   0x3   :  { %19 = dma.hbm_to_smem %s17_s23, 16, %s2148_s25, [#allocation5] }
   0x4   :  { %2135 = dma.done.wait [#allocation5], 32 }
   0x5   :  { %2136 = vsyncadd [#allocation5], 4294967264 }
   0x6   :  { %22 = sfence }
   0x7   :  { %23 = vsyncpa [#allocation9], 0 }
   0x8   :  { %24 = vsyncpa [#allocation10], 0  ;;  %s29_s28 = sshll.u32 %s2747_s3, 4  ;;  %s2149_s0 = smov [#allocation8]   ;;  %s30_s28 = int_to_ptr.hbm [resolvable:$true] %s29_s28 }
   0x9   :  { %s31_s29 = sshll.u32 %s2149_s0, 4  ;;  %s2150_s1 = smov 128   ;;  %s32_s29 = int_to_ptr.vmem [resolvable:$true] %s31_s29 }
   0xa   :  { %s2151_s30 = smov 8  }
   0xb   :  { %37 = dma.hbm_to_vmem [thread:$0]  %s30_s28, 2048, %s32_s29, [#allocation9], %s2150_s1, %s2150_s1, %s2151_s30  }
   0xc   :  { %2137 = dma.done.wait [#allocation9], 2048  }
   0xd   :  { %2138 = vsyncadd [#allocation9], 4294965248  ;;  %s46_s6 = sld [smem:[#allocation6]]  ;;  %s2152_s7 = smov [#allocation3]  }
   0xe   :  { %s2224_s8 = sshll.u32 %s2152_s7, 4  ;;  %s952_s9 = sld [smem:[#allocation6 + $0x1]]  ;;  %s72_s8 = int_to_ptr.vmem [resolvable:$true] %s2224_s8 }
   0xf   :  { %s2153_s10 = smov [#allocation3 + $0x1]   ;;  %s2229_s3 = sld [smem:[#allocation6 + $0x2]] }
  0x10   :  { %s2227_s11 = sshll.u32 %s2153_s10, 4  ;;  %s2154_s12 = smov [#allocation3 + $0x2]   ;;  %s87_s11 = int_to_ptr.vmem [resolvable:$true] %s2227_s11 }
  0x11   :  { %s2232_s13 = sshll.u32 %s2154_s12, 4  ;;  %s2234_s14 = sld [smem:[#allocation6 + $0x3]]  ;;  %s102_s13 = int_to_ptr.vmem [resolvable:$true] %s2232_s13 }
  0x12   :  { %s2155_s18 = smov [#allocation3 + $0x3]   ;;  %s2248_s0 = scalar_lea.hbm %s2746_s2, 64 }
  0x13   :  { %s61_s17 = scalar_lea.hbm %s2746_s2, %s46_s6  ;;  %s2240_s19 = sshll.u32 %s2155_s18, 4  ;;  %s117_s19 = int_to_ptr.vmem [resolvable:$true] %s2240_s19 }
  0x14   :  { %s69_s20 = sshll.u32 %s61_s17, 4  ;;  %s75_s23 = scalar_lea.hbm %s2746_s2, %s952_s9  ;;  %s70_s20 = int_to_ptr.hbm [resolvable:$true] %s69_s20 }
  0x15   :  { %s84_s24 = sshll.u32 %s75_s23, 4  ;;  %s1115_s25 = sshra.s32 %s70_s20, 4  ;;  %s1116_s25 = int_to_ptr.hbm [resolvable:$true] %s1115_s25  ;;  %s85_s24 = int_to_ptr.hbm [resolvable:$true] %s84_s24 }
  0x16   :  { %s1117_s26 = scalar_lea.hbm %s1116_s25, 1  ;;  %p1120_p1 = scmp.lt.s32.totalorder %s1116_s25, %s2746_s2 }
  0x17   :  { %p1118_p0 = scmp.ne.s32.totalorder %s1116_s25, %s1117_s26  ;;  %p1121_p2 = scmp.lt.s32.totalorder %s2248_s0, %s1117_s26 }
  0x19   :  { %p1122_p3 = por %p1121_p2, %p1120_p1 }
  0x1b   :  { %p1123_p4 = pnand %p1122_p3, %p1118_p0 }
  0x1d   :  { %1126 = shalt.err (!%p1123_p4)  }
  0x1e   :  { %74 = dma.hbm_to_vmem [thread:$0]  %s70_s20, 16, %s72_s8, [#allocation4] }
  0x1f   :  { %s90_s7 = scalar_lea.hbm %s2746_s2, %s2229_s3  ;;  %s1139_s9 = sshra.s32 %s85_s24, 4  ;;  %s1140_s9 = int_to_ptr.hbm [resolvable:$true] %s1139_s9 }
  0x20   :  { %s1141_s10 = scalar_lea.hbm %s1140_s9, 1  ;;  %p1144_p6 = scmp.lt.s32.totalorder %s1140_s9, %s2746_s2 }
  0x21   :  { %p1142_p5 = scmp.ne.s32.totalorder %s1140_s9, %s1141_s10  ;;  %p1145_p7 = scmp.lt.s32.totalorder %s2248_s0, %s1141_s10 }
  0x23   :  { %p1146_p8 = por %p1145_p7, %p1144_p6 }
  0x25   :  { %p1147_p9 = pnand %p1146_p8, %p1142_p5 }
  0x27   :  { %1150 = shalt.err (!%p1147_p9)  }
  0x28   :  { %89 = dma.hbm_to_vmem [thread:$0]  %s85_s24, 16, %s87_s11, [#allocation4] }
  0x29   :  { %s99_s8 = sshll.u32 %s90_s7, 4  ;;  %s105_s17 = scalar_lea.hbm %s2746_s2, %s2234_s14  ;;  %s100_s8 = int_to_ptr.hbm [resolvable:$true] %s99_s8 }
  0x2a   :  { %s114_s18 = sshll.u32 %s105_s17, 4  ;;  %s1163_s20 = sshra.s32 %s100_s8, 4  ;;  %s1164_s20 = int_to_ptr.hbm [resolvable:$true] %s1163_s20  ;;  %s115_s18 = int_to_ptr.hbm [resolvable:$true] %s114_s18 }
  0x2b   :  { %s1165_s21 = scalar_lea.hbm %s1164_s20, 1  ;;  %p1168_p11 = scmp.lt.s32.totalorder %s1164_s20, %s2746_s2 }
  0x2c   :  { %p1166_p10 = scmp.ne.s32.totalorder %s1164_s20, %s1165_s21  ;;  %p1169_p12 = scmp.lt.s32.totalorder %s2248_s0, %s1165_s21 }
  0x2e   :  { %p1170_p13 = por %p1169_p12, %p1168_p11 }
  0x30   :  { %p1171_p0 = pnand %p1170_p13, %p1166_p10 }
  0x32   :  { %1174 = shalt.err (!%p1171_p0)  }
  0x33   :  { %104 = dma.hbm_to_vmem [thread:$0]  %s100_s8, 16, %s102_s13, [#allocation4] }
  0x34   :  { %s1187_s11 = sshra.s32 %s115_s18, 4  ;;  %s1188_s11 = int_to_ptr.hbm [resolvable:$true] %s1187_s11 }
  0x35   :  { %s1189_s14 = scalar_lea.hbm %s1188_s11, 1  ;;  %p1192_p2 = scmp.lt.s32.totalorder %s1188_s11, %s2746_s2 }
  0x36   :  { %p1190_p1 = scmp.ne.s32.totalorder %s1188_s11, %s1189_s14  ;;  %p1193_p3 = scmp.lt.s32.totalorder %s2248_s0, %s1189_s14 }
  0x38   :  { %p1194_p4 = por %p1193_p3, %p1192_p2 }
  0x3a   :  { %p1195_p5 = pnand %p1194_p4, %p1190_p1 }
  0x3c   :  { %1198 = shalt.err (!%p1195_p5)  }
  0x3d   :  { %119 = dma.hbm_to_vmem [thread:$0]  %s115_s18, 16, %s117_s19, [#allocation4] }
  0x3e   :  { %s955_s26 = sld [smem:[#allocation6 + $0x4]]  ;;  %s2156_s27 = smov [#allocation3 + $0x4]  }
  0x3f   :  { %s131_s28 = sshll.u32 %s2156_s27, 4  ;;  %s956_s29 = sld [smem:[#allocation6 + $0x5]]  ;;  %s132_s28 = int_to_ptr.vmem [resolvable:$true] %s131_s28 }
  0x40   :  { %s2157_s13 = smov [#allocation3 + $0x5]   ;;  %s2281_s30 = sld [smem:[#allocation6 + $0x6]] }
  0x41   :  { %s2279_s1 = sshll.u32 %s2157_s13, 4  ;;  %s2158_s6 = smov [#allocation3 + $0x6]   ;;  %s147_s1 = int_to_ptr.vmem [resolvable:$true] %s2279_s1 }
  0x42   :  { %s2284_s7 = sshll.u32 %s2158_s6, 4  ;;  %s2286_s9 = sld [smem:[#allocation6 + $0x7]]  ;;  %s162_s7 = int_to_ptr.vmem [resolvable:$true] %s2284_s7 }
  0x44   :  { %s120_s12 = scalar_lea.hbm %s2746_s2, %s955_s26 }
  0x45   :  { %s129_s15 = sshll.u32 %s120_s12, 4  ;;  %s135_s3 = scalar_lea.hbm %s2746_s2, %s956_s29  ;;  %s130_s15 = int_to_ptr.hbm [resolvable:$true] %s129_s15 }
  0x46   :  { %s144_s17 = sshll.u32 %s135_s3, 4  ;;  %s1211_s18 = sshra.s32 %s130_s15, 4  ;;  %s1212_s18 = int_to_ptr.hbm [resolvable:$true] %s1211_s18  ;;  %s145_s17 = int_to_ptr.hbm [resolvable:$true] %s144_s17 }
  0x47   :  { %s1213_s20 = scalar_lea.hbm %s1212_s18, 1  ;;  %p1216_p7 = scmp.lt.s32.totalorder %s1212_s18, %s2746_s2 }
  0x48   :  { %p1214_p6 = scmp.ne.s32.totalorder %s1212_s18, %s1213_s20  ;;  %p1217_p8 = scmp.lt.s32.totalorder %s2248_s0, %s1213_s20 }
  0x4a   :  { %p1218_p9 = por %p1217_p8, %p1216_p7 }
  0x4c   :  { %p1219_p10 = pnand %p1218_p9, %p1214_p6 }
  0x4e   :  { %1222 = shalt.err (!%p1219_p10)  }
  0x4f   :  { %134 = dma.hbm_to_vmem [thread:$0]  %s130_s15, 16, %s132_s28, [#allocation4] }
  0x50   :  { %s150_s14 = scalar_lea.hbm %s2746_s2, %s2281_s30  ;;  %s1235_s24 = sshra.s32 %s145_s17, 4  ;;  %s1236_s24 = int_to_ptr.hbm [resolvable:$true] %s1235_s24 }
  0x51   :  { %s1237_s25 = scalar_lea.hbm %s1236_s24, 1  ;;  %p1240_p12 = scmp.lt.s32.totalorder %s1236_s24, %s2746_s2 }
  0x52   :  { %p1238_p11 = scmp.ne.s32.totalorder %s1236_s24, %s1237_s25  ;;  %p1241_p13 = scmp.lt.s32.totalorder %s2248_s0, %s1237_s25 }
  0x54   :  { %p1242_p0 = por %p1241_p13, %p1240_p12 }
  0x56   :  { %p1243_p1 = pnand %p1242_p0, %p1238_p11 }
  0x58   :  { %1246 = shalt.err (!%p1243_p1)  }
  0x59   :  { %149 = dma.hbm_to_vmem [thread:$0]  %s145_s17, 16, %s147_s1, [#allocation4] }
  0x5a   :  { %s159_s28 = sshll.u32 %s150_s14, 4  ;;  %s165_s30 = scalar_lea.hbm %s2746_s2, %s2286_s9  ;;  %s160_s28 = int_to_ptr.hbm [resolvable:$true] %s159_s28 }
  0x5b   :  { %s174_s6 = sshll.u32 %s165_s30, 4  ;;  %s1259_s19 = sshra.s32 %s160_s28, 4  ;;  %s1260_s19 = int_to_ptr.hbm [resolvable:$true] %s1259_s19  ;;  %s175_s6 = int_to_ptr.hbm [resolvable:$true] %s174_s6 }
  0x5c   :  { %s1261_s10 = scalar_lea.hbm %s1260_s19, 1  ;;  %p1264_p3 = scmp.lt.s32.totalorder %s1260_s19, %s2746_s2 }
  0x5d   :  { %p1262_p2 = scmp.ne.s32.totalorder %s1260_s19, %s1261_s10  ;;  %p1265_p4 = scmp.lt.s32.totalorder %s2248_s0, %s1261_s10 }
  0x5f   :  { %p1266_p5 = por %p1265_p4, %p1264_p3 }
  0x61   :  { %p1267_p6 = pnand %p1266_p5, %p1262_p2 }
  0x63   :  { %1270 = shalt.err (!%p1267_p6)  }
  0x64   :  { %164 = dma.hbm_to_vmem [thread:$0]  %s160_s28, 16, %s162_s7, [#allocation4] }
  0x65   :  { %s2159_s1 = smov [#allocation3 + $0x7]   ;;  %s959_s8 = sld [smem:[#allocation6 + $0x8]] }
  0x66   :  { %s176_s9 = sshll.u32 %s2159_s1, 4  ;;  %s1283_s16 = sshra.s32 %s175_s6, 4  ;;  %s177_s9 = int_to_ptr.vmem [resolvable:$true] %s176_s9  ;;  %s1284_s16 = int_to_ptr.hbm [resolvable:$true] %s1283_s16 }
  0x67   :  { %s1285_s3 = scalar_lea.hbm %s1284_s16, 1  ;;  %p1288_p8 = scmp.lt.s32.totalorder %s1284_s16, %s2746_s2 }
  0x68   :  { %p1286_p7 = scmp.ne.s32.totalorder %s1284_s16, %s1285_s3  ;;  %p1289_p9 = scmp.lt.s32.totalorder %s2248_s0, %s1285_s3 }
  0x6a   :  { %p1290_p10 = por %p1289_p9, %p1288_p8 }
  0x6c   :  { %p1291_p11 = pnand %p1290_p10, %p1286_p7 }
  0x6e   :  { %1294 = shalt.err (!%p1291_p11)  }
  0x6f   :  { %179 = dma.hbm_to_vmem [thread:$0]  %s175_s6, 16, %s177_s9, [#allocation4] }
  0x70   :  { %s2160_s20 = smov [#allocation3 + $0x8]   ;;  %s960_s21 = sld [smem:[#allocation6 + $0x9]] }
  0x71   :  { %s209_s7 = sshll.u32 %s2160_s20, 4  ;;  %s2161_s22 = smov [#allocation3 + $0x9]   ;;  %s210_s7 = int_to_ptr.vmem [resolvable:$true] %s209_s7 }
  0x72   :  { %s2323_s23 = sshll.u32 %s2161_s22, 4  ;;  %s961_s11 = sld [smem:[#allocation6 + $0xa]]  ;;  %s225_s23 = int_to_ptr.vmem [resolvable:$true] %s2323_s23 }
  0x73   :  { %s197_s25 = scalar_lea.hbm %s2746_s2, %s959_s8  ;;  %s2162_s27 = smov [#allocation3 + $0xa]  }
  0x74   :  { %s207_s26 = sshll.u32 %s197_s25, 4  ;;  %s2329_s28 = sshll.u32 %s2162_s27, 4  ;;  %s208_s26 = int_to_ptr.hbm [resolvable:$true] %s207_s26  ;;  %s240_s28 = int_to_ptr.vmem [resolvable:$true] %s2329_s28 }
  0x75   :  { %s1307_s29 = sshra.s32 %s208_s26, 4  ;;  %s1308_s29 = int_to_ptr.hbm [resolvable:$true] %s1307_s29 }
  0x76   :  { %s1309_s13 = scalar_lea.hbm %s1308_s29, 1  ;;  %p1312_p13 = scmp.lt.s32.totalorder %s1308_s29, %s2746_s2 }
  0x77   :  { %p1310_p12 = scmp.ne.s32.totalorder %s1308_s29, %s1309_s13  ;;  %p1313_p0 = scmp.lt.s32.totalorder %s2248_s0, %s1309_s13 }
  0x79   :  { %p1314_p1 = por %p1313_p0, %p1312_p13 }
  0x7b   :  { %p1315_p2 = pnand %p1314_p1, %p1310_p12 }
  0x7d   :  { %1318 = shalt.err (!%p1315_p2)  }
  0x7e   :  { %212 = dma.hbm_to_vmem [thread:$0]  %s208_s26, 16, %s210_s7, [#allocation4 + $0x1] }
  0x7f   :  { %s213_s12 = scalar_lea.hbm %s2746_s2, %s960_s21  ;;  %s228_s8 = scalar_lea.hbm %s2746_s2, %s961_s11 }
  0x80   :  { %s222_s15 = sshll.u32 %s213_s12, 4  ;;  %s237_s16 = sshll.u32 %s228_s8, 4  ;;  %s223_s15 = int_to_ptr.hbm [resolvable:$true] %s222_s15  ;;  %s238_s16 = int_to_ptr.hbm [resolvable:$true] %s237_s16 }
  0x81   :  { %s1331_s3 = sshra.s32 %s223_s15, 4  ;;  %s1332_s3 = int_to_ptr.hbm [resolvable:$true] %s1331_s3 }
  0x82   :  { %s1333_s17 = scalar_lea.hbm %s1332_s3, 1  ;;  %p1336_p4 = scmp.lt.s32.totalorder %s1332_s3, %s2746_s2 }
  0x83   :  { %p1334_p3 = scmp.ne.s32.totalorder %s1332_s3, %s1333_s17  ;;  %p1337_p5 = scmp.lt.s32.totalorder %s2248_s0, %s1333_s17 }
  0x85   :  { %p1338_p6 = por %p1337_p5, %p1336_p4 }
  0x87   :  { %p1339_p7 = pnand %p1338_p6, %p1334_p3 }
  0x89   :  { %1342 = shalt.err (!%p1339_p7)  }
  0x8a   :  { %227 = dma.hbm_to_vmem [thread:$0]  %s223_s15, 16, %s225_s23, [#allocation4 + $0x1] }
  0x8b   :  { %s962_s7 = sld [smem:[#allocation6 + $0xb]]  ;;  %s1355_s21 = sshra.s32 %s238_s16, 4  ;;  %s1356_s21 = int_to_ptr.hbm [resolvable:$true] %s1355_s21 }
  0x8c   :  { %s1357_s22 = scalar_lea.hbm %s1356_s21, 1  ;;  %p1360_p9 = scmp.lt.s32.totalorder %s1356_s21, %s2746_s2 }
  0x8d   :  { %p1358_p8 = scmp.ne.s32.totalorder %s1356_s21, %s1357_s22  ;;  %p1361_p10 = scmp.lt.s32.totalorder %s2248_s0, %s1357_s22 }
  0x8f   :  { %p1362_p11 = por %p1361_p10, %p1360_p9 }
  0x91   :  { %p1363_p12 = pnand %p1362_p11, %p1358_p8 }
  0x93   :  { %1366 = shalt.err (!%p1363_p12)  }
  0x94   :  { %242 = dma.hbm_to_vmem [thread:$0]  %s238_s16, 16, %s240_s28, [#allocation4 + $0x1] }
  0x95   :  { %s963_s24 = sld [smem:[#allocation6 + $0xc]]  ;;  %s2163_s25 = smov [#allocation3 + $0xb]  }
  0x96   :  { %s254_s26 = sshll.u32 %s2163_s25, 4  ;;  %s2164_s23 = smov [#allocation3 + $0xc]   ;;  %s255_s26 = int_to_ptr.vmem [resolvable:$true] %s254_s26 }
  0x97   :  { %s2352_s27 = sshll.u32 %s2164_s23, 4  ;;  %s2355_s29 = sld [smem:[#allocation6 + $0xd]]  ;;  %s270_s27 = int_to_ptr.vmem [resolvable:$true] %s2352_s27 }
  0x98   :  { %s243_s6 = scalar_lea.hbm %s2746_s2, %s962_s7  ;;  %s2165_s10 = smov [#allocation3 + $0xd]  }
  0x99   :  { %s252_s19 = sshll.u32 %s243_s6, 4  ;;  %s2360_s12 = sshll.u32 %s2165_s10, 4  ;;  %s253_s19 = int_to_ptr.hbm [resolvable:$true] %s252_s19  ;;  %s285_s12 = int_to_ptr.vmem [resolvable:$true] %s2360_s12 }
  0x9a   :  { %s1379_s9 = sshra.s32 %s253_s19, 4  ;;  %s1380_s9 = int_to_ptr.hbm [resolvable:$true] %s1379_s9 }
  0x9b   :  { %s258_s1 = scalar_lea.hbm %s2746_s2, %s963_s24  ;;  %s1381_s8 = scalar_lea.hbm %s1380_s9, 1 }
  0x9c   :  { %p1382_p13 = scmp.ne.s32.totalorder %s1380_s9, %s1381_s8  ;;  %p1384_p0 = scmp.lt.s32.totalorder %s1380_s9, %s2746_s2 }
  0x9d   :  { %p1385_p1 = scmp.lt.s32.totalorder %s2248_s0, %s1381_s8 }
  0x9f   :  { %p1386_p2 = por %p1385_p1, %p1384_p0 }
  0xa1   :  { %p1387_p3 = pnand %p1386_p2, %p1382_p13 }
  0xa3   :  { %1390 = shalt.err (!%p1387_p3)  }
  0xa4   :  { %257 = dma.hbm_to_vmem [thread:$0]  %s253_s19, 16, %s255_s26, [#allocation4 + $0x1] }
  0xa5   :  { %s267_s17 = sshll.u32 %s258_s1, 4  ;;  %s273_s7 = scalar_lea.hbm %s2746_s2, %s2355_s29  ;;  %s268_s17 = int_to_ptr.hbm [resolvable:$true] %s267_s17 }
  0xa6   :  { %s1403_s21 = sshra.s32 %s268_s17, 4  ;;  %s1404_s21 = int_to_ptr.hbm [resolvable:$true] %s1403_s21 }
  0xa7   :  { %s1405_s22 = scalar_lea.hbm %s1404_s21, 1  ;;  %p1408_p5 = scmp.lt.s32.totalorder %s1404_s21, %s2746_s2 }
  0xa8   :  { %p1406_p4 = scmp.ne.s32.totalorder %s1404_s21, %s1405_s22  ;;  %p1409_p6 = scmp.lt.s32.totalorder %s2248_s0, %s1405_s22 }
  0xaa   :  { %p1410_p7 = por %p1409_p6, %p1408_p5 }
  0xac   :  { %p1411_p8 = pnand %p1410_p7, %p1406_p4 }
  0xae   :  { %1414 = shalt.err (!%p1411_p8)  }
  0xaf   :  { %272 = dma.hbm_to_vmem [thread:$0]  %s268_s17, 16, %s270_s27, [#allocation4 + $0x1] }
  0xb0   :  { %s282_s24 = sshll.u32 %s273_s7, 4  ;;  %s965_s25 = sld [smem:[#allocation6 + $0xe]]  ;;  %s283_s24 = int_to_ptr.hbm [resolvable:$true] %s282_s24 }
  0xb1   :  { %s1427_s26 = sshra.s32 %s283_s24, 4  ;;  %s1428_s26 = int_to_ptr.hbm [resolvable:$true] %s1427_s26 }
  0xb2   :  { %s1429_s23 = scalar_lea.hbm %s1428_s26, 1  ;;  %p1432_p10 = scmp.lt.s32.totalorder %s1428_s26, %s2746_s2 }
  0xb3   :  { %p1430_p9 = scmp.ne.s32.totalorder %s1428_s26, %s1429_s23  ;;  %p1433_p11 = scmp.lt.s32.totalorder %s2248_s0, %s1429_s23 }
  0xb5   :  { %p1434_p12 = por %p1433_p11, %p1432_p10 }
  0xb7   :  { %p1435_p13 = pnand %p1434_p12, %p1430_p9 }
  0xb9   :  { %1438 = shalt.err (!%p1435_p13)  }
  0xba   :  { %287 = dma.hbm_to_vmem [thread:$0]  %s283_s24, 16, %s285_s12, [#allocation4 + $0x1] }
  0xbb   :  { %s2166_s30 = smov [#allocation3 + $0xe]   ;;  %s966_s19 = sld [smem:[#allocation6 + $0xf]] }
  0xbc   :  { %s299_s6 = sshll.u32 %s2166_s30, 4  ;;  %s2167_s27 = smov [#allocation3 + $0xf]   ;;  %s300_s6 = int_to_ptr.vmem [resolvable:$true] %s299_s6 }
  0xbd   :  { %s2384_s10 = sshll.u32 %s2167_s27, 4  ;;  %s967_s28 = sld [smem:[#allocation6 + $0x10]]  ;;  %s315_s10 = int_to_ptr.vmem [resolvable:$true] %s2384_s10 }
  0xbe   :  { %s288_s9 = scalar_lea.hbm %s2746_s2, %s965_s25  ;;  %s2168_s16 = smov [#allocation3 + $0x10]  }
  0xbf   :  { %s297_s8 = sshll.u32 %s288_s9, 4  ;;  %s2390_s3 = sshll.u32 %s2168_s16, 4  ;;  %s298_s8 = int_to_ptr.hbm [resolvable:$true] %s297_s8  ;;  %s348_s3 = int_to_ptr.vmem [resolvable:$true] %s2390_s3 }
  0xc0   :  { %s1451_s12 = sshra.s32 %s298_s8, 4  ;;  %s1452_s12 = int_to_ptr.hbm [resolvable:$true] %s1451_s12 }
  0xc1   :  { %s1453_s17 = scalar_lea.hbm %s1452_s12, 1  ;;  %p1456_p1 = scmp.lt.s32.totalorder %s1452_s12, %s2746_s2 }
  0xc2   :  { %p1454_p0 = scmp.ne.s32.totalorder %s1452_s12, %s1453_s17  ;;  %p1457_p2 = scmp.lt.s32.totalorder %s2248_s0, %s1453_s17 }
  0xc4   :  { %p1458_p3 = por %p1457_p2, %p1456_p1 }
  0xc6   :  { %p1459_p4 = pnand %p1458_p3, %p1454_p0 }
  0xc8   :  { %1462 = shalt.err (!%p1459_p4)  }
  0xc9   :  { %302 = dma.hbm_to_vmem [thread:$0]  %s298_s8, 16, %s300_s6, [#allocation4 + $0x1] }
  0xca   :  { %s303_s22 = scalar_lea.hbm %s2746_s2, %s966_s19  ;;  %s335_s25 = scalar_lea.hbm %s2746_s2, %s967_s28 }
  0xcb   :  { %s312_s11 = sshll.u32 %s303_s22, 4  ;;  %s345_s26 = sshll.u32 %s335_s25, 4  ;;  %s313_s11 = int_to_ptr.hbm [resolvable:$true] %s312_s11  ;;  %s346_s26 = int_to_ptr.hbm [resolvable:$true] %s345_s26 }
  0xcc   :  { %s1475_s23 = sshra.s32 %s313_s11, 4  ;;  %s1476_s23 = int_to_ptr.hbm [resolvable:$true] %s1475_s23 }
  0xcd   :  { %s1477_s29 = scalar_lea.hbm %s1476_s23, 1  ;;  %p1480_p6 = scmp.lt.s32.totalorder %s1476_s23, %s2746_s2 }
  0xce   :  { %p1478_p5 = scmp.ne.s32.totalorder %s1476_s23, %s1477_s29  ;;  %p1481_p7 = scmp.lt.s32.totalorder %s2248_s0, %s1477_s29 }
  0xd0   :  { %p1482_p8 = por %p1481_p7, %p1480_p6 }
  0xd2   :  { %p1483_p9 = pnand %p1482_p8, %p1478_p5 }
  0xd4   :  { %1486 = shalt.err (!%p1483_p9)  }
  0xd5   :  { %317 = dma.hbm_to_vmem [thread:$0]  %s313_s11, 16, %s315_s10, [#allocation4 + $0x1] }
  0xd6   :  { %s968_s6 = sld [smem:[#allocation6 + $0x11]]  ;;  %s1499_s19 = sshra.s32 %s346_s26, 4  ;;  %s1500_s19 = int_to_ptr.hbm [resolvable:$true] %s1499_s19 }
  0xd7   :  { %s1501_s27 = scalar_lea.hbm %s1500_s19, 1  ;;  %p1504_p11 = scmp.lt.s32.totalorder %s1500_s19, %s2746_s2 }
  0xd8   :  { %p1502_p10 = scmp.ne.s32.totalorder %s1500_s19, %s1501_s27  ;;  %p1505_p12 = scmp.lt.s32.totalorder %s2248_s0, %s1501_s27 }
  0xda   :  { %p1506_p13 = por %p1505_p12, %p1504_p11 }
  0xdc   :  { %p1507_p0 = pnand %p1506_p13, %p1502_p10 }
  0xde   :  { %1510 = shalt.err (!%p1507_p0)  }
  0xdf   :  { %350 = dma.hbm_to_vmem [thread:$0]  %s346_s26, 16, %s348_s3, [#allocation4 + $0x2] }
  0xe0   :  { %s969_s1 = sld [smem:[#allocation6 + $0x12]]  ;;  %s2169_s9 = smov [#allocation3 + $0x11]  }
  0xe1   :  { %s362_s8 = sshll.u32 %s2169_s9, 4  ;;  %s2170_s10 = smov [#allocation3 + $0x12]   ;;  %s363_s8 = int_to_ptr.vmem [resolvable:$true] %s362_s8 }
  0xe2   :  { %s2413_s16 = sshll.u32 %s2170_s10, 4  ;;  %s2416_s12 = sld [smem:[#allocation6 + $0x13]]  ;;  %s378_s16 = int_to_ptr.vmem [resolvable:$true] %s2413_s16 }
  0xe3   :  { %s351_s20 = scalar_lea.hbm %s2746_s2, %s968_s6  ;;  %s2171_s21 = smov [#allocation3 + $0x13]  }
  0xe4   :  { %s360_s7 = sshll.u32 %s351_s20, 4  ;;  %s2421_s22 = sshll.u32 %s2171_s21, 4  ;;  %s361_s7 = int_to_ptr.hbm [resolvable:$true] %s360_s7  ;;  %s393_s22 = int_to_ptr.vmem [resolvable:$true] %s2421_s22 }
  0xe5   :  { %s1523_s24 = sshra.s32 %s361_s7, 4  ;;  %s1524_s24 = int_to_ptr.hbm [resolvable:$true] %s1523_s24 }
  0xe6   :  { %s366_s14 = scalar_lea.hbm %s2746_s2, %s969_s1  ;;  %s1525_s25 = scalar_lea.hbm %s1524_s24, 1 }
  0xe7   :  { %p1526_p1 = scmp.ne.s32.totalorder %s1524_s24, %s1525_s25  ;;  %p1528_p2 = scmp.lt.s32.totalorder %s1524_s24, %s2746_s2 }
  0xe8   :  { %p1529_p3 = scmp.lt.s32.totalorder %s2248_s0, %s1525_s25 }
  0xea   :  { %p1530_p4 = por %p1529_p3, %p1528_p2 }
  0xec   :  { %p1531_p5 = pnand %p1530_p4, %p1526_p1 }
  0xee   :  { %1534 = shalt.err (!%p1531_p5)  }
  0xef   :  { %365 = dma.hbm_to_vmem [thread:$0]  %s361_s7, 16, %s363_s8, [#allocation4 + $0x2] }
  0xf0   :  { %s375_s29 = sshll.u32 %s366_s14, 4  ;;  %s381_s6 = scalar_lea.hbm %s2746_s2, %s2416_s12  ;;  %s376_s29 = int_to_ptr.hbm [resolvable:$true] %s375_s29 }
  0xf1   :  { %s1547_s19 = sshra.s32 %s376_s29, 4  ;;  %s1548_s19 = int_to_ptr.hbm [resolvable:$true] %s1547_s19 }
  0xf2   :  { %s1549_s27 = scalar_lea.hbm %s1548_s19, 1  ;;  %p1552_p7 = scmp.lt.s32.totalorder %s1548_s19, %s2746_s2 }
  0xf3   :  { %p1550_p6 = scmp.ne.s32.totalorder %s1548_s19, %s1549_s27  ;;  %p1553_p8 = scmp.lt.s32.totalorder %s2248_s0, %s1549_s27 }
  0xf5   :  { %p1554_p9 = por %p1553_p8, %p1552_p7 }
  0xf7   :  { %p1555_p10 = pnand %p1554_p9, %p1550_p6 }
  0xf9   :  { %1558 = shalt.err (!%p1555_p10)  }
  0xfa   :  { %380 = dma.hbm_to_vmem [thread:$0]  %s376_s29, 16, %s378_s16, [#allocation4 + $0x2] }
  0xfb   :  { %s390_s1 = sshll.u32 %s381_s6, 4  ;;  %s971_s9 = sld [smem:[#allocation6 + $0x14]]  ;;  %s391_s1 = int_to_ptr.hbm [resolvable:$true] %s390_s1 }
  0xfc   :  { %s1571_s8 = sshra.s32 %s391_s1, 4  ;;  %s1572_s8 = int_to_ptr.hbm [resolvable:$true] %s1571_s8 }
  0xfd   :  { %s1573_s10 = scalar_lea.hbm %s1572_s8, 1  ;;  %p1576_p12 = scmp.lt.s32.totalorder %s1572_s8, %s2746_s2 }
  0xfe   :  { %p1574_p11 = scmp.ne.s32.totalorder %s1572_s8, %s1573_s10  ;;  %p1577_p13 = scmp.lt.s32.totalorder %s2248_s0, %s1573_s10 }
 0x100   :  { %p1578_p0 = por %p1577_p13, %p1576_p12 }
 0x102   :  { %p1579_p1 = pnand %p1578_p0, %p1574_p11 }
 0x104   :  { %1582 = shalt.err (!%p1579_p1)  }
 0x105   :  { %395 = dma.hbm_to_vmem [thread:$0]  %s391_s1, 16, %s393_s22, [#allocation4 + $0x2] }
 0x106   :  { %s2172_s18 = smov [#allocation3 + $0x14]   ;;  %s972_s7 = sld [smem:[#allocation6 + $0x15]] }
 0x107   :  { %s407_s20 = sshll.u32 %s2172_s18, 4  ;;  %s2173_s16 = smov [#allocation3 + $0x15]   ;;  %s408_s20 = int_to_ptr.vmem [resolvable:$true] %s407_s20 }
 0x108   :  { %s2445_s21 = sshll.u32 %s2173_s16, 4  ;;  %s973_s3 = sld [smem:[#allocation6 + $0x16]]  ;;  %s423_s21 = int_to_ptr.vmem [resolvable:$true] %s2445_s21 }
 0x109   :  { %s396_s24 = scalar_lea.hbm %s2746_s2, %s971_s9  ;;  %s2174_s26 = smov [#allocation3 + $0x16]  }
 0x10a   :  { %s405_s25 = sshll.u32 %s396_s24, 4  ;;  %s2451_s23 = sshll.u32 %s2174_s26, 4  ;;  %s406_s25 = int_to_ptr.hbm [resolvable:$true] %s405_s25  ;;  %s438_s23 = int_to_ptr.vmem [resolvable:$true] %s2451_s23 }
 0x10b   :  { %s1595_s22 = sshra.s32 %s406_s25, 4  ;;  %s1596_s22 = int_to_ptr.hbm [resolvable:$true] %s1595_s22 }
 0x10c   :  { %s1597_s29 = scalar_lea.hbm %s1596_s22, 1  ;;  %p1600_p3 = scmp.lt.s32.totalorder %s1596_s22, %s2746_s2 }
 0x10d   :  { %p1598_p2 = scmp.ne.s32.totalorder %s1596_s22, %s1597_s29  ;;  %p1601_p4 = scmp.lt.s32.totalorder %s2248_s0, %s1597_s29 }
 0x10f   :  { %p1602_p5 = por %p1601_p4, %p1600_p3 }
 0x111   :  { %p1603_p6 = pnand %p1602_p5, %p1598_p2 }
 0x113   :  { %1606 = shalt.err (!%p1603_p6)  }
 0x114   :  { %410 = dma.hbm_to_vmem [thread:$0]  %s406_s25, 16, %s408_s20, [#allocation4 + $0x2] }
 0x115   :  { %s411_s27 = scalar_lea.hbm %s2746_s2, %s972_s7  ;;  %s426_s9 = scalar_lea.hbm %s2746_s2, %s973_s3 }
 0x116   :  { %s420_s28 = sshll.u32 %s411_s27, 4  ;;  %s435_s8 = sshll.u32 %s426_s9, 4  ;;  %s421_s28 = int_to_ptr.hbm [resolvable:$true] %s420_s28  ;;  %s436_s8 = int_to_ptr.hbm [resolvable:$true] %s435_s8 }
 0x117   :  { %s1619_s10 = sshra.s32 %s421_s28, 4  ;;  %s1620_s10 = int_to_ptr.hbm [resolvable:$true] %s1619_s10 }
 0x118   :  { %s1621_s12 = scalar_lea.hbm %s1620_s10, 1  ;;  %p1624_p8 = scmp.lt.s32.totalorder %s1620_s10, %s2746_s2 }
 0x119   :  { %p1622_p7 = scmp.ne.s32.totalorder %s1620_s10, %s1621_s12  ;;  %p1625_p9 = scmp.lt.s32.totalorder %s2248_s0, %s1621_s12 }
 0x11b   :  { %p1626_p10 = por %p1625_p9, %p1624_p8 }
 0x11d   :  { %p1627_p11 = pnand %p1626_p10, %p1622_p7 }
 0x11f   :  { %1630 = shalt.err (!%p1627_p11)  }
 0x120   :  { %425 = dma.hbm_to_vmem [thread:$0]  %s421_s28, 16, %s423_s21, [#allocation4 + $0x2] }
 0x121   :  { %s974_s20 = sld [smem:[#allocation6 + $0x17]]  ;;  %s1643_s7 = sshra.s32 %s436_s8, 4  ;;  %s1644_s7 = int_to_ptr.hbm [resolvable:$true] %s1643_s7 }
 0x122   :  { %s1645_s16 = scalar_lea.hbm %s1644_s7, 1  ;;  %p1648_p13 = scmp.lt.s32.totalorder %s1644_s7, %s2746_s2 }
 0x123   :  { %p1646_p12 = scmp.ne.s32.totalorder %s1644_s7, %s1645_s16  ;;  %p1649_p0 = scmp.lt.s32.totalorder %s2248_s0, %s1645_s16 }
 0x125   :  { %p1650_p1 = por %p1649_p0, %p1648_p13 }
 0x127   :  { %p1651_p2 = pnand %p1650_p1, %p1646_p12 }
 0x129   :  { %1654 = shalt.err (!%p1651_p2)  }
 0x12a   :  { %440 = dma.hbm_to_vmem [thread:$0]  %s436_s8, 16, %s438_s23, [#allocation4 + $0x2]  ;;  %v594_v0 = vlaneseq }
 0x12b   :  { %s975_s14 = sld [smem:[#allocation6 + $0x18]]  ;;  %s2175_s24 = smov [#allocation3 + $0x17]  }
 0x12c   :  { %s452_s25 = sshll.u32 %s2175_s24, 4  ;;  %s2176_s21 = smov [#allocation3 + $0x18]   ;;  %s453_s25 = int_to_ptr.vmem [resolvable:$true] %s452_s25 }
 0x12d   :  { %s2474_s26 = sshll.u32 %s2176_s21, 4  ;;  %s2477_s22 = sld [smem:[#allocation6 + $0x19]]  ;;  %s486_s26 = int_to_ptr.vmem [resolvable:$true] %s2474_s26 }
 0x12e   :  { %s441_s30 = scalar_lea.hbm %s2746_s2, %s974_s20  ;;  %s2177_s19 = smov [#allocation3 + $0x19]  }
 0x12f   :  { %s450_s6 = sshll.u32 %s441_s30, 4  ;;  %s2482_s27 = sshll.u32 %s2177_s19, 4  ;;  %s451_s6 = int_to_ptr.hbm [resolvable:$true] %s450_s6  ;;  %s501_s27 = int_to_ptr.vmem [resolvable:$true] %s2482_s27 }
 0x130   :  { %s1667_s1 = sshra.s32 %s451_s6, 4  ;;  %s1668_s1 = int_to_ptr.hbm [resolvable:$true] %s1667_s1 }
 0x131   :  { %s473_s15 = scalar_lea.hbm %s2746_s2, %s975_s14  ;;  %s1669_s9 = scalar_lea.hbm %s1668_s1, 1 }
 0x132   :  { %p1670_p3 = scmp.ne.s32.totalorder %s1668_s1, %s1669_s9  ;;  %p1672_p4 = scmp.lt.s32.totalorder %s1668_s1, %s2746_s2 }
 0x133   :  { %p1673_p5 = scmp.lt.s32.totalorder %s2248_s0, %s1669_s9 }
 0x135   :  { %p1674_p6 = por %p1673_p5, %p1672_p4 }
 0x137   :  { %p1675_p7 = pnand %p1674_p6, %p1670_p3 }
 0x139   :  { %1678 = shalt.err (!%p1675_p7)  }
 0x13a   :  { %455 = dma.hbm_to_vmem [thread:$0]  %s451_s6, 16, %s453_s25, [#allocation4 + $0x2]  ;;  %v2492_v1 = vshrl.u32 %v594_v0, 7 }
 0x13b   :  { %s483_s12 = sshll.u32 %s473_s15, 4  ;;  %s489_s20 = scalar_lea.hbm %s2746_s2, %s2477_s22  ;;  %s484_s12 = int_to_ptr.hbm [resolvable:$true] %s483_s12 }
 0x13c   :  { %s1691_s7 = sshra.s32 %s484_s12, 4  ;;  %s1692_s7 = int_to_ptr.hbm [resolvable:$true] %s1691_s7 }
 0x13d   :  { %s1693_s16 = scalar_lea.hbm %s1692_s7, 1  ;;  %p1696_p9 = scmp.lt.s32.totalorder %s1692_s7, %s2746_s2 }
 0x13e   :  { %p1694_p8 = scmp.ne.s32.totalorder %s1692_s7, %s1693_s16  ;;  %p1697_p10 = scmp.lt.s32.totalorder %s2248_s0, %s1693_s16 }
 0x140   :  { %p1698_p11 = por %p1697_p10, %p1696_p9 }
 0x142   :  { %p1699_p12 = pnand %p1698_p11, %p1694_p8 }
 0x144   :  { %1702 = shalt.err (!%p1699_p12)  }
 0x145   :  { %488 = dma.hbm_to_vmem [thread:$0]  %s484_s12, 16, %s486_s26, [#allocation4 + $0x3] }
 0x146   :  { %s498_s14 = sshll.u32 %s489_s20, 4  ;;  %s977_s24 = sld [smem:[#allocation6 + $0x1a]]  ;;  %s499_s14 = int_to_ptr.hbm [resolvable:$true] %s498_s14 }
 0x147   :  { %s1715_s25 = sshra.s32 %s499_s14, 4  ;;  %s1716_s25 = int_to_ptr.hbm [resolvable:$true] %s1715_s25 }
 0x148   :  { %s1717_s21 = scalar_lea.hbm %s1716_s25, 1  ;;  %p1720_p0 = scmp.lt.s32.totalorder %s1716_s25, %s2746_s2 }
 0x149   :  { %p1718_p13 = scmp.ne.s32.totalorder %s1716_s25, %s1717_s21  ;;  %p1721_p1 = scmp.lt.s32.totalorder %s2248_s0, %s1717_s21 }
 0x14b   :  { %p1722_p2 = por %p1721_p1, %p1720_p0 }
 0x14d   :  { %p1723_p3 = pnand %p1722_p2, %p1718_p13 }
 0x14f   :  { %1726 = shalt.err (!%p1723_p3)  }
 0x150   :  { %503 = dma.hbm_to_vmem [thread:$0]  %s499_s14, 16, %s501_s27, [#allocation4 + $0x3] }
 0x151   :  { %s2178_s13 = smov [#allocation3 + $0x1a]   ;;  %s978_s6 = sld [smem:[#allocation6 + $0x1b]] }
 0x152   :  { %s515_s30 = sshll.u32 %s2178_s13, 4  ;;  %s2179_s26 = smov [#allocation3 + $0x1b]   ;;  %s516_s30 = int_to_ptr.vmem [resolvable:$true] %s515_s30 }
 0x153   :  { %s2508_s19 = sshll.u32 %s2179_s26, 4  ;;  %s979_s23 = sld [smem:[#allocation6 + $0x1c]]  ;;  %s531_s19 = int_to_ptr.vmem [resolvable:$true] %s2508_s19 }
 0x154   :  { %s504_s1 = scalar_lea.hbm %s2746_s2, %s977_s24  ;;  %s2180_s8 = smov [#allocation3 + $0x1c]  }
 0x155   :  { %s513_s9 = sshll.u32 %s504_s1, 4  ;;  %s2514_s10 = sshll.u32 %s2180_s8, 4  ;;  %s514_s9 = int_to_ptr.hbm [resolvable:$true] %s513_s9  ;;  %s546_s10 = int_to_ptr.vmem [resolvable:$true] %s2514_s10 }
 0x156   :  { %s1739_s27 = sshra.s32 %s514_s9, 4  ;;  %s1740_s27 = int_to_ptr.hbm [resolvable:$true] %s1739_s27 }
 0x157   :  { %s1741_s12 = scalar_lea.hbm %s1740_s27, 1  ;;  %p1744_p5 = scmp.lt.s32.totalorder %s1740_s27, %s2746_s2 }
 0x158   :  { %p1742_p4 = scmp.ne.s32.totalorder %s1740_s27, %s1741_s12  ;;  %p1745_p6 = scmp.lt.s32.totalorder %s2248_s0, %s1741_s12 }
 0x15a   :  { %p1746_p7 = por %p1745_p6, %p1744_p5 }
 0x15c   :  { %p1747_p8 = pnand %p1746_p7, %p1742_p4 }
 0x15e   :  { %1750 = shalt.err (!%p1747_p8)  }
 0x15f   :  { %518 = dma.hbm_to_vmem [thread:$0]  %s514_s9, 16, %s516_s30, [#allocation4 + $0x3] }
 0x160   :  { %s519_s16 = scalar_lea.hbm %s2746_s2, %s978_s6  ;;  %s534_s24 = scalar_lea.hbm %s2746_s2, %s979_s23 }
 0x161   :  { %s528_s3 = sshll.u32 %s519_s16, 4  ;;  %s543_s25 = sshll.u32 %s534_s24, 4  ;;  %s529_s3 = int_to_ptr.hbm [resolvable:$true] %s528_s3  ;;  %s544_s25 = int_to_ptr.hbm [resolvable:$true] %s543_s25 }
 0x162   :  { %s1763_s21 = sshra.s32 %s529_s3, 4  ;;  %s1764_s21 = int_to_ptr.hbm [resolvable:$true] %s1763_s21 }
 0x163   :  { %s1765_s22 = scalar_lea.hbm %s1764_s21, 1  ;;  %p1768_p10 = scmp.lt.s32.totalorder %s1764_s21, %s2746_s2 }
 0x164   :  { %p1766_p9 = scmp.ne.s32.totalorder %s1764_s21, %s1765_s22  ;;  %p1769_p11 = scmp.lt.s32.totalorder %s2248_s0, %s1765_s22 }
 0x166   :  { %p1770_p12 = por %p1769_p11, %p1768_p10 }
 0x168   :  { %p1771_p13 = pnand %p1770_p12, %p1766_p9 }
 0x16a   :  { %1774 = shalt.err (!%p1771_p13)  }
 0x16b   :  { %533 = dma.hbm_to_vmem [thread:$0]  %s529_s3, 16, %s531_s19, [#allocation4 + $0x3] }
 0x16c   :  { %s980_s30 = sld [smem:[#allocation6 + $0x1d]]  ;;  %s1787_s6 = sshra.s32 %s544_s25, 4  ;;  %s1788_s6 = int_to_ptr.hbm [resolvable:$true] %s1787_s6 }
 0x16d   :  { %s1789_s26 = scalar_lea.hbm %s1788_s6, 1  ;;  %p1792_p1 = scmp.lt.s32.totalorder %s1788_s6, %s2746_s2 }
 0x16e   :  { %p1790_p0 = scmp.ne.s32.totalorder %s1788_s6, %s1789_s26  ;;  %p1793_p2 = scmp.lt.s32.totalorder %s2248_s0, %s1789_s26 }
 0x170   :  { %p1794_p3 = por %p1793_p2, %p1792_p1 }
 0x172   :  { %p1795_p4 = pnand %p1794_p3, %p1790_p0 }
 0x174   :  { %1798 = shalt.err (!%p1795_p4)  }
 0x175   :  { %548 = dma.hbm_to_vmem [thread:$0]  %s544_s25, 16, %s546_s10, [#allocation4 + $0x3] }
 0x176   :  { %s981_s15 = sld [smem:[#allocation6 + $0x1e]]  ;;  %s2181_s1 = smov [#allocation3 + $0x1d]  }
 0x177   :  { %s560_s9 = sshll.u32 %s2181_s1, 4  ;;  %s2182_s19 = smov [#allocation3 + $0x1e]   ;;  %s561_s9 = int_to_ptr.vmem [resolvable:$true] %s560_s9 }
 0x178   :  { %s2537_s8 = sshll.u32 %s2182_s19, 4  ;;  %s2540_s27 = sld [smem:[#allocation6 + $0x1f]]  ;;  %s576_s8 = int_to_ptr.vmem [resolvable:$true] %s2537_s8 }
 0x179   :  { %s549_s18 = scalar_lea.hbm %s2746_s2, %s980_s30  ;;  %s2183_s7 = smov [#allocation3 + $0x1f]  }
 0x17a   :  { %s558_s20 = sshll.u32 %s549_s18, 4  ;;  %s2545_s16 = sshll.u32 %s2183_s7, 4  ;;  %s559_s20 = int_to_ptr.hbm [resolvable:$true] %s558_s20  ;;  %s591_s16 = int_to_ptr.vmem [resolvable:$true] %s2545_s16 }
 0x17b   :  { %s1811_s14 = sshra.s32 %s559_s20, 4  ;;  %s1812_s14 = int_to_ptr.hbm [resolvable:$true] %s1811_s14 }
 0x17c   :  { %s564_s11 = scalar_lea.hbm %s2746_s2, %s981_s15  ;;  %s1813_s24 = scalar_lea.hbm %s1812_s14, 1 }
 0x17d   :  { %p1814_p5 = scmp.ne.s32.totalorder %s1812_s14, %s1813_s24  ;;  %p1816_p6 = scmp.lt.s32.totalorder %s1812_s14, %s2746_s2 }
 0x17e   :  { %p1817_p7 = scmp.lt.s32.totalorder %s2248_s0, %s1813_s24 }
 0x180   :  { %p1818_p8 = por %p1817_p7, %p1816_p6 }
 0x182   :  { %p1819_p9 = pnand %p1818_p8, %p1814_p5 }
 0x184   :  { %1822 = shalt.err (!%p1819_p9)  }
 0x185   :  { %563 = dma.hbm_to_vmem [thread:$0]  %s559_s20, 16, %s561_s9, [#allocation4 + $0x3] }
 0x186   :  { %s573_s22 = sshll.u32 %s564_s11, 4  ;;  %s579_s30 = scalar_lea.hbm %s2746_s2, %s2540_s27  ;;  %s574_s22 = int_to_ptr.hbm [resolvable:$true] %s573_s22 }
 0x187   :  { %s1835_s6 = sshra.s32 %s574_s22, 4  ;;  %s1836_s6 = int_to_ptr.hbm [resolvable:$true] %s1835_s6 }
 0x188   :  { %s1837_s26 = scalar_lea.hbm %s1836_s6, 1  ;;  %p1840_p11 = scmp.lt.s32.totalorder %s1836_s6, %s2746_s2 }
 0x189   :  { %p1838_p10 = scmp.ne.s32.totalorder %s1836_s6, %s1837_s26  ;;  %p1841_p12 = scmp.lt.s32.totalorder %s2248_s0, %s1837_s26 }
 0x18b   :  { %p1842_p13 = por %p1841_p12, %p1840_p11 }
 0x18d   :  { %p1843_p0 = pnand %p1842_p13, %p1838_p10 }
 0x18f   :  { %1846 = shalt.err (!%p1843_p0)  }
 0x190   :  { %578 = dma.hbm_to_vmem [thread:$0]  %s574_s22, 16, %s576_s8, [#allocation4 + $0x3] }
 0x191   :  { %s588_s15 = sshll.u32 %s579_s30, 4  ;;  %s589_s15 = int_to_ptr.hbm [resolvable:$true] %s588_s15 }
 0x192   :  { %s1859_s1 = sshra.s32 %s589_s15, 4  ;;  %s1860_s1 = int_to_ptr.hbm [resolvable:$true] %s1859_s1 }
 0x193   :  { %s1861_s9 = scalar_lea.hbm %s1860_s1, 1  ;;  %p1864_p2 = scmp.lt.s32.totalorder %s1860_s1, %s2746_s2 }
 0x194   :  { %p1862_p1 = scmp.ne.s32.totalorder %s1860_s1, %s1861_s9  ;;  %p1865_p3 = scmp.lt.s32.totalorder %s2248_s0, %s1861_s9 }
 0x196   :  { %p1866_p4 = por %p1865_p3, %p1864_p2 }
 0x198   :  { %p1867_p5 = pnand %p1866_p4, %p1862_p1 }
 0x19a   :  { %1870 = shalt.err (!%p1867_p5)  }
 0x19b   :  { %593 = dma.hbm_to_vmem [thread:$0]  %s589_s15, 16, %s591_s16, [#allocation4 + $0x3] }
 0x19c   :  { %s2569_s12 = smov 0  }
 0x19d LB: > { %s602_s8 = sand.u32 3, %s2145_s12  ;;  %s604_s17 = sld [smem:[#allocation7 + %s2145_s12]]  ;;  %s2145_s12 = sphi %s2569_s12, %s601_s12  }
 0x19e   : > { %s1002_s18 = sshll.u32 %s2145_s12, 3  ;;  %s984_s20 = sshll.u32 %s602_s8, 3 }
 0x19f   : > { %s1003_s7 = sadd.s32 32, %s1002_s18  ;;  %s2593_s15 = scalar_lea.vmem [#allocation3], %s984_s20 }
 0x1a0   : > { %s609_s10 = sld [smem:[#allocation6 + %s1003_s7]]  ;;  %s610_s3 = sadd.s32 1, %s1003_s7 }
 0x1a1   : > { %s2577_s11 = sld [smem:[#allocation6 + %s610_s3]]  ;;  %s612_s16 = sadd.s32 2, %s1003_s7 }
 0x1a2   : > { %s2579_s14 = sld [smem:[#allocation6 + %s612_s16]]  ;;  %s614_s24 = sadd.s32 3, %s1003_s7 }
 0x1a3   : > { %p605_p6 = scmp.lt.s32.totalorder %s604_s17, 8  ;;  %s2581_s25 = sld [smem:[#allocation6 + %s614_s24]] }
 0x1a4   : > { %s616_s21 = sadd.s32 4, %s1003_s7  ;;  %s618_s22 = sadd.s32 5, %s1003_s7 }
 0x1a5   : > { %s2583_s29 = scalar_select %p605_p6, %s604_s17, 8 }
 0x1a6   : > { %s2585_s13 = sld [smem:[#allocation6 + %s616_s21]]  ;;  %s620_s30 = sadd.s32 6, %s1003_s7 }
 0x1a7   : > { %s2587_s6 = sld [smem:[#allocation6 + %s618_s22]]  ;;  %s622_s26 = sadd.s32 7, %s1003_s7 }
 0x1a8   : > { %s2589_s23 = sld [smem:[#allocation6 + %s620_s30]]  ;;  %s2595_s1 = scalar_lea.sflag [#allocation4], %s602_s8 }
 0x1a9   : > { %s2591_s28 = sld [smem:[#allocation6 + %s622_s26]]  ;;  %p993_p7 = scmp.gt.s32.totalorder %s604_s17, 1 }
 0x1aa   : > { %2139 = dma.done.wait %s2595_s1, 128 }
 0x1ab   : > { %2140 = vsyncadd %s2595_s1, 4294967168  ;;  %s631_s9 = sadd.s32 4, %s2145_s12  ;;  %s636_s20 = scalar_lea.hbm %s2746_s2, %s609_s10  ;;  %v2618_v3 = vld [vmem:[%s2593_s15] sm:$0xff] }
 0x1ac   : > { %p2600_p8 = scmp.lt.s32.totalorder %s631_s9, 8  ;;  %s646_s17 = sshll.u32 %s2593_s15, 4  ;;  %s647_s17 = int_to_ptr.vmem [resolvable:$true] %s646_s17 }
 0x1ad   : > { %s1005_s27 = scalar_select %p993_p7, %s2583_s29, 1 }
 0x1ae   : > { %s644_s3 = sshll.u32 %s636_s20, 4  ;;  %s650_s21 = scalar_lea.hbm %s2746_s2, %s2577_s11  ;;  %s645_s3 = int_to_ptr.hbm [resolvable:$true] %s644_s3 }
 0x1af   : > { %s764_s7 = scvt.s32.f32 %s1005_s27  ;;  %s921_s22 = scalar_lea.vmem %s2593_s15, 1 [#allocation3] }
 0x1b0   : > { %s2620_s30 = sshll.u32 %s650_s21, 4  ;;  %s662_s10 = sshll.u32 %s921_s22, 4  ;;  %s661_s30 = int_to_ptr.hbm [resolvable:$true] %s2620_s30  ;;  %s663_s10 = int_to_ptr.vmem [resolvable:$true] %s662_s10 }
 0x1b1   : > { %v2609_v2 = vstv %s764_s7  ;;  %s1883_s26 = sshra.s32 %s645_s3, 4  ;;  %s1884_s26 = int_to_ptr.hbm [resolvable:$true] %s1883_s26 }
 0x1b2   : > { %1064 = vrcp.f32 %v2609_v2  ;;  %s1885_s9 = scalar_lea.hbm %s1884_s26, 1  ;;  %p1890_p12 = scmp.lt.s32.totalorder %s1884_s26, %s2746_s2 }
 0x1b3   : > { %p1886_p9 = scmp.ne.s32.totalorder %s1884_s26, %s1885_s9  ;;  %p1891_p13 = scmp.lt.s32.totalorder %s2248_s0, %s1885_s9 }
 0x1b5   : > { %p1887_p10 = pnand %p1886_p9, %p2600_p8  ;;  %p1892_p0 = por %p1891_p13, %p1890_p12 }
 0x1b7   : > { %p1888_p11 = pneg %p1887_p10 }
 0x1b9   : > { %p1893_p1 = pnand %p1892_p0, %p1888_p11 }
 0x1bb   : > { %1896 = shalt.err (!%p1893_p1)  }
 0x1bc   : > { %1009 = dma.hbm_to_vmem [thread:$0]  (%p2600_p8), %s645_s3, 16, %s647_s17, %s2595_s1 }
 0x1bd   : > { %s1911_s11 = sshra.s32 %s661_s30, 4  ;;  %s1912_s11 = int_to_ptr.hbm [resolvable:$true] %s1911_s11 }
 0x1be   : > { %s1913_s8 = scalar_lea.hbm %s1912_s11, 1  ;;  %p1918_p5 = scmp.lt.s32.totalorder %s1912_s11, %s2746_s2 }
 0x1bf   : > { %p1914_p2 = scmp.ne.s32.totalorder %s1912_s11, %s1913_s8  ;;  %p1919_p6 = scmp.lt.s32.totalorder %s2248_s0, %s1913_s8 }
 0x1c1   : > { %p1915_p3 = pnand %p1914_p2, %p2600_p8  ;;  %p1920_p7 = por %p1919_p6, %p1918_p5 }
 0x1c3   : > { %p1916_p4 = pneg %p1915_p3 }
 0x1c5   : > { %p1921_p9 = pnand %p1920_p7, %p1916_p4 }
 0x1c7   : > { %1924 = shalt.err (!%p1921_p9)  }
 0x1c8   : > { %1010 = dma.hbm_to_vmem [thread:$0]  (%p2600_p8), %s661_s30, 16, %s663_s10, %s2595_s1  ;;  %v1065_v4 = vpop.eup %1064 }
 0x1c9   : > { %s666_s16 = scalar_lea.hbm %s2746_s2, %s2579_s14  ;;  %s925_s24 = scalar_lea.vmem %s2593_s15, 2 [#allocation3]  ;;  %v767_v5 = vmul.f32 %v1065_v4, %v2609_v2 }
 0x1ca   : > { %s676_s21 = sshll.u32 %s666_s16, 4  ;;  %s678_s22 = sshll.u32 %s925_s24, 4  ;;  %s677_s21 = int_to_ptr.hbm [resolvable:$true] %s676_s21  ;;  %s679_s22 = int_to_ptr.vmem [resolvable:$true] %s678_s22 }
 0x1cb   : > { %s1939_s26 = sshra.s32 %s677_s21, 4  ;;  %s1940_s26 = int_to_ptr.hbm [resolvable:$true] %s1939_s26 }
 0x1cc   : > { %s1941_s9 = scalar_lea.hbm %s1940_s26, 1  ;;  %p1946_p13 = scmp.lt.s32.totalorder %s1940_s26, %s2746_s2 }
 0x1cd   : > { %p1942_p10 = scmp.ne.s32.totalorder %s1940_s26, %s1941_s9  ;;  %p1947_p0 = scmp.lt.s32.totalorder %s2248_s0, %s1941_s9 }
 0x1cf   : > { %p1943_p11 = pnand %p1942_p10, %p2600_p8  ;;  %p1948_p1 = por %p1947_p0, %p1946_p13 }
 0x1d1   : > { %p1944_p12 = pneg %p1943_p11 }
 0x1d3   : > { %p1949_p2 = pnand %p1948_p1, %p1944_p12 }
 0x1d5   : > { %1952 = shalt.err (!%p1949_p2)  }
 0x1d6   : > { %1011 = dma.hbm_to_vmem [thread:$0]  (%p2600_p8), %s677_s21, 16, %s679_s22, %s2595_s1  ;;  %v777_v6 = vand.u32 2147483648, %v2609_v2  ;;  %v768_v7 = vsub.f32 1.0, %v767_v5  ;;  %vm771_vm0 = vweird.f32 %v2609_v2  ;;  %vm772_vm1 = vweird.f32 %v1065_v4 }
 0x1d7   : > { %s682_s18 = scalar_lea.hbm %s2746_s2, %s2581_s25  ;;  %s929_s11 = scalar_lea.vmem %s2593_s15, 3 [#allocation3]  ;;  %v775_v8 = vand.u32 2147483647, %v2609_v2 }
 0x1d8   : > { %s692_s8 = sshll.u32 %s682_s18, 4  ;;  %s694_s20 = sshll.u32 %s929_s11, 4  ;;  %v769_v9 = vmul.f32 %v1065_v4, %v768_v7  ;;  %s693_s8 = int_to_ptr.hbm [resolvable:$true] %s692_s8  ;;  %s695_s20 = int_to_ptr.vmem [resolvable:$true] %s694_s20 }
 0x1d9   : > { %s1967_s7 = sshra.s32 %s693_s8, 4  ;;  %s1968_s7 = int_to_ptr.hbm [resolvable:$true] %s1967_s7 }
 0x1da   : > { %s1969_s17 = scalar_lea.hbm %s1968_s7, 1  ;;  %p1974_p6 = scmp.lt.s32.totalorder %s1968_s7, %s2746_s2 }
 0x1db   : > { %p1970_p3 = scmp.ne.s32.totalorder %s1968_s7, %s1969_s17  ;;  %p1975_p7 = scmp.lt.s32.totalorder %s2248_s0, %s1969_s17 }
 0x1dd   : > { %p1971_p4 = pnand %p1970_p3, %p2600_p8  ;;  %p1976_p9 = por %p1975_p7, %p1974_p6 }
 0x1df   : > { %p1972_p5 = pneg %p1971_p4 }
 0x1e1   : > { %p1977_p10 = pnand %p1976_p9, %p1972_p5 }
 0x1e3   : > { %1980 = shalt.err (!%p1977_p10)  }
 0x1e4   : > { %1012 = dma.hbm_to_vmem [thread:$0]  (%p2600_p8), %s693_s8, 16, %s695_s20, %s2595_s1  ;;  %vm773_vm2 = vmor %vm771_vm0, %vm772_vm1  ;;  %v778_v10 = vor.u32 1.1754944e-38, %v777_v6  ;;  %v770_v11 = vadd.f32 %v1065_v4, %v769_v9  ;;  %vm776_vm3 = vcmp.eq.f32.partialorder %v775_v8, 8.507059e+37 }
 0x1e5   : > { %s698_s21 = scalar_lea.hbm %s2746_s2, %s2585_s13  ;;  %s933_s22 = scalar_lea.vmem %s2593_s15, 4 [#allocation3] }
 0x1e6   : > { %s708_s26 = sshll.u32 %s698_s21, 4  ;;  %s710_s9 = sshll.u32 %s933_s22, 4  ;;  %v774_v12 = vsel %vm773_vm2, %v1065_v4, %v770_v11  ;;  %s709_s26 = int_to_ptr.hbm [resolvable:$true] %s708_s26  ;;  %s711_s9 = int_to_ptr.vmem [resolvable:$true] %s710_s9 }
 0x1e7   : > { %s714_s14 = scalar_lea.hbm %s2746_s2, %s2587_s6  ;;  %v779_v13 = vsel %vm776_vm3, %v778_v10, %v774_v12  ;;  %s1995_s27 = sshra.s32 %s709_s26, 4  ;;  %s1996_s27 = int_to_ptr.hbm [resolvable:$true] %s1995_s27 }
 0x1e8   : > { %s1997_s18 = scalar_lea.hbm %s1996_s27, 1  ;;  %p2002_p0 = scmp.lt.s32.totalorder %s1996_s27, %s2746_s2 }
 0x1e9   : > { %p1998_p11 = scmp.ne.s32.totalorder %s1996_s27, %s1997_s18  ;;  %p2003_p1 = scmp.lt.s32.totalorder %s2248_s0, %s1997_s18 }
 0x1eb   : > { %p1999_p12 = pnand %p1998_p11, %p2600_p8  ;;  %p2004_p2 = por %p2003_p1, %p2002_p0 }
 0x1ed   : > { %p2000_p13 = pneg %p1999_p12 }
 0x1ef   : > { %p2005_p3 = pnand %p2004_p2, %p2000_p13 }
 0x1f1   : > { %2008 = shalt.err (!%p2005_p3)  }
 0x1f2   : > { %1013 = dma.hbm_to_vmem [thread:$0]  (%p2600_p8), %s709_s26, 16, %s711_s9, %s2595_s1  ;;  %1006 = vpush %v779_v13 }
 0x1f3   : > { %s937_s6 = scalar_lea.vmem %s2593_s15, 5 [#allocation3]  ;;  %s724_s8 = sshll.u32 %s714_s14, 4  ;;  %s725_s8 = int_to_ptr.hbm [resolvable:$true] %s724_s8 }
 0x1f4   : > { %s726_s20 = sshll.u32 %s937_s6, 4  ;;  %s730_s25 = scalar_lea.hbm %s2746_s2, %s2589_s23  ;;  %s727_s20 = int_to_ptr.vmem [resolvable:$true] %s726_s20 }
 0x1f5   : > { %s2023_s3 = sshra.s32 %s725_s8, 4  ;;  %s2024_s3 = int_to_ptr.hbm [resolvable:$true] %s2023_s3 }
 0x1f6   : > { %s2025_s16 = scalar_lea.hbm %s2024_s3, 1  ;;  %p2030_p7 = scmp.lt.s32.totalorder %s2024_s3, %s2746_s2 }
 0x1f7   : > { %p2026_p4 = scmp.ne.s32.totalorder %s2024_s3, %s2025_s16  ;;  %p2031_p9 = scmp.lt.s32.totalorder %s2248_s0, %s2025_s16 }
 0x1f9   : > { %p2027_p5 = pnand %p2026_p4, %p2600_p8  ;;  %p2032_p10 = por %p2031_p9, %p2030_p7 }
 0x1fb   : > { %p2028_p6 = pneg %p2027_p5 }
 0x1fd   : > { %p2033_p11 = pnand %p2032_p10, %p2028_p6 }
 0x1ff   : > { %2036 = shalt.err (!%p2033_p11)  }
 0x200   : > { %1014 = dma.hbm_to_vmem [thread:$0]  (%p2600_p8), %s725_s8, 16, %s727_s20, %s2595_s1 }
 0x201   : > { %s941_s23 = scalar_lea.vmem %s2593_s15, 6 [#allocation3]  ;;  %s740_s22 = sshll.u32 %s730_s25, 4  ;;  %s741_s22 = int_to_ptr.hbm [resolvable:$true] %s740_s22 }
 0x202   : > { %s742_s26 = sshll.u32 %s941_s23, 4  ;;  %s746_s10 = scalar_lea.hbm %s2746_s2, %s2591_s28  ;;  %s743_s26 = int_to_ptr.vmem [resolvable:$true] %s742_s26 }
 0x203   : > { %s2051_s14 = sshra.s32 %s741_s22, 4  ;;  %s2052_s14 = int_to_ptr.hbm [resolvable:$true] %s2051_s14 }
 0x204   : > { %s2053_s27 = scalar_lea.hbm %s2052_s14, 1  ;;  %p2058_p1 = scmp.lt.s32.totalorder %s2052_s14, %s2746_s2 }
 0x205   : > { %p2054_p12 = scmp.ne.s32.totalorder %s2052_s14, %s2053_s27  ;;  %p2059_p2 = scmp.lt.s32.totalorder %s2248_s0, %s2053_s27 }
 0x207   : > { %p2055_p13 = pnand %p2054_p12, %p2600_p8  ;;  %p2060_p3 = por %p2059_p2, %p2058_p1 }
 0x209   : > { %p2056_p0 = pneg %p2055_p13 }
 0x20b   : > { %p2061_p4 = pnand %p2060_p3, %p2056_p0 }
 0x20d   : > { %2064 = shalt.err (!%p2061_p4)  }
 0x20e   : > { %1015 = dma.hbm_to_vmem [thread:$0]  (%p2600_p8), %s741_s22, 16, %s743_s26, %s2595_s1 }
 0x20f   : > { %s945_s28 = scalar_lea.vmem %s2593_s15, 7 [#allocation3]  ;;  %s756_s11 = sshll.u32 %s746_s10, 4  ;;  %s757_s11 = int_to_ptr.hbm [resolvable:$true] %s756_s11 }
 0x210   : > { %s758_s6 = sshll.u32 %s945_s28, 4  ;;  %s2079_s8 = sshra.s32 %s757_s11, 4  ;;  %s759_s6 = int_to_ptr.vmem [resolvable:$true] %s758_s6  ;;  %s2080_s8 = int_to_ptr.hbm [resolvable:$true] %s2079_s8 }
 0x211   : > { %s2081_s20 = scalar_lea.hbm %s2080_s8, 1  ;;  %p2086_p9 = scmp.lt.s32.totalorder %s2080_s8, %s2746_s2 }
 0x212   : > { %p2082_p5 = scmp.ne.s32.totalorder %s2080_s8, %s2081_s20  ;;  %p2087_p10 = scmp.lt.s32.totalorder %s2248_s0, %s2081_s20 }
 0x214   : > { %p2083_p6 = pnand %p2082_p5, %p2600_p8  ;;  %p2088_p11 = por %p2087_p10, %p2086_p9 }
 0x216   : > { %p2084_p7 = pneg %p2083_p6 }
 0x218   : > { %p2089_p12 = pnand %p2088_p11, %p2084_p7 }
 0x21a   : > { %2092 = shalt.err (!%p2089_p12)  }
 0x21b   : > { %1016 = dma.hbm_to_vmem [thread:$0]  (%p2600_p8), %s757_s11, 16, %s759_s6, %s2595_s1  ;;  %v781_v14 = vstv %s2583_s29 }
 0x21c   : > { %vm782_vm4 = vcmp.lt.s32.totalorder %v2492_v1, %v781_v14  ;;  %s794_s25 = scalar_lea.vmem [#allocation2], %s2145_s12  ;;  %s601_s12 = sadd.s32 1, %s2145_s12  }
 0x21d   : > { %v785_v15 = vsel %vm782_vm4, %v2618_v3, 0.0  ;;  %p598_p13 = scmp.ge.s32.totalorder %s601_s12, 8  }
 0x21e   : > { %v786_v16 = vrot.slane %v785_v15, 4  ;;  %v812_v24 = vld [vmem:[#allocation8 + $0x78] sm:$0xff] (%p598_p13)  ;;  %v811_v25 = vld [vmem:[#allocation8 + $0x70] sm:$0xff] (%p598_p13)  ;;  %v810_v26 = vld [vmem:[#allocation8 + $0x68] sm:$0xff] (%p598_p13)  ;;  %s2184_s12 = smov (%p598_p13), [#allocation11]   ;;  %s845_s3 = sshll.u32 (%p598_p13), %s2749_s5, 4  ;;  %s846_s3 = int_to_ptr.hbm [resolvable:$true] %s845_s3 }
 0x21f   :  { %817 = vmatpush.msra.mxu0 (%p598_p13), %v812_v24  ;;  %v809_v27 = vld [vmem:[#allocation8 + $0x60] sm:$0xff] (%p598_p13)  ;;  %v808_v28 = vld [vmem:[#allocation8 + $0x58] sm:$0xff] (%p598_p13)  ;;  %v807_v29 = vld [vmem:[#allocation8 + $0x50] sm:$0xff] (%p598_p13)  ;;  %s843_s29 = sshll.u32 (%p598_p13), %s2184_s12, 4  ;;  %s844_s29 = int_to_ptr.vmem [resolvable:$true] %s843_s29 }
 0x220   : > { %v787_v17 = vadd.f32 %v786_v16, %v785_v15  ;;  %v806_v30 = vld [vmem:[#allocation8 + $0x48] sm:$0xff] (%p598_p13)  ;;  %v805_v31 = vld [vmem:[#allocation8 + $0x40] sm:$0xff] (%p598_p13)  ;;  %v804_v32 = vld [vmem:[#allocation8 + $0x38] sm:$0xff] (%p598_p13) }
 0x221   :  { %818 = vmatpush.msra.mxu0 (%p598_p13), %v811_v25  ;;  %v803_v33 = vld [vmem:[#allocation8 + $0x30] sm:$0xff] (%p598_p13)  ;;  %v802_v34 = vld [vmem:[#allocation8 + $0x28] sm:$0xff] (%p598_p13)  ;;  %v801_v35 = vld [vmem:[#allocation8 + $0x20] sm:$0xff] (%p598_p13) }
 0x222   : > { %v788_v18 = vrot.slane %v787_v17, 2  ;;  %v800_v36 = vld [vmem:[#allocation8 + $0x18] sm:$0xff] (%p598_p13)  ;;  %v799_v37 = vld [vmem:[#allocation8 + $0x10] sm:$0xff] (%p598_p13)  ;;  %v798_v38 = vld [vmem:[#allocation8 + $0x8] sm:$0xff] (%p598_p13) }
 0x223   : > { %s1007_s15 = spop %1006  ;;  %819 = vmatpush.msra.mxu0 (%p598_p13), %v810_v26  ;;  %v797_v39 = vld [vmem:[#allocation8] sm:$0xff] (%p598_p13)  ;;  %v1066_v41 = vld [vmem:[%s2748_s4] ss:$0 sm:$0xff] (%p598_p13) }
 0x224   : > { %v789_v19 = vadd.f32 %v788_v18, %v787_v17  ;;  %v792_v22 = vstv %s1007_s15 }
 0x225   :  { %820 = vmatpush.msra.mxu0 (%p598_p13), %v809_v27 }
 0x226   : > { %v790_v20 = vrot.slane %v789_v19, 1 }
 0x227   :  { %821 = vmatpush.msra.mxu0 (%p598_p13), %v808_v28 }
 0x228   : > { %v791_v21 = vadd.f32 %v790_v20, %v789_v19  ;;  %600 = sbr.rel (!%p598_p13) target bundleno = 413 (0x19d), region = 290 }
 0x229   :  { %822 = vmatpush.msra.mxu0 (%p598_p13), %v807_v29 }
 0x22a   : > { %v793_v23 = vmul.f32 %v792_v22, %v791_v21 }
 0x22b   :  { %823 = vmatpush.msra.mxu0 (%p598_p13), %v806_v30 }
 0x22c   : > { %795 = vst [vmem:[%s794_s25] sm:$0x1] %v793_v23 }
 0x22d   :  { %824 = vmatpush.msra.mxu0 %v805_v31 }
 0x22f   :  { %825 = vmatpush.msra.mxu0 %v804_v32 }
 0x231   :  { %826 = vmatpush.msra.mxu0 %v803_v33 }
 0x233   :  { %827 = vmatpush.msra.mxu0 %v802_v34  ;;  %v796_v40 = vld [vmem:[#allocation2] sm:$0xff] }
 0x235   :  { %828 = vmatpush.msra.mxu0 %v801_v35 }
 0x237   :  { %829 = vmatpush.msra.mxu0 %v800_v36 }
 0x239   :  { %830 = vmatpush.msra.mxu0 %v799_v37 }
 0x23b   :  { %831 = vmatpush.msra.mxu0 %v798_v38 }
 0x23d   :  { %832 = vmatpush.msra.mxu0 %v797_v39 }
 0x23e   :  { %833 = vmatmul.f32.vlgmr.msra.gmra.mxu0 %v796_v40 }
 0x2bb   :  { %v834_v42 = vpop.f32.mrf.mxu0 }
 0x2bc   :  { %v835_v43 = vadd.f32 %v1066_v41, %v834_v42 }
 0x2be   :  { %837 = vst [vmem:[#allocation11] sm:$0xff] %v835_v43 }
 0x2bf   :  { %848 = dma.vmem_to_hbm [thread:$0]  %s844_s29, 128, %s846_s3, [#allocation10]  }
 0x2c0   :  { %2141 = dma.done.wait [#allocation10], 128  }
 0x2c1   :  { %2142 = vsyncadd [#allocation10], 4294967168 }
 0x2c2   :  { %853 = vsyncpa [#allocation9], 1 }
 0x2c3   :  { %854 = vsyncpa [#allocation10], 1 }
 0x2c4   :  { %855 = vsyncmov [#allocation4] }
 0x2c7   :  { %s856_s16 = vpop.sfrf %855 }
 0x2c8   :  { %p998_p8 = scmp.ne.s32.totalorder %s856_s16, 0 }
 0x2ca   :  { %860 = shalt.err (%p998_p8)  }
 0x2cb   :  { %862 = vsyncmov [#allocation4 + $0x1] }
 0x2ce   :  { %s863_s4 = vpop.sfrf %862 }
 0x2cf   :  { %p999_p0 = scmp.ne.s32.totalorder %s863_s4, 0 }
 0x2d1   :  { %867 = shalt.err (%p999_p0)  }
 0x2d2   :  { %869 = vsyncmov [#allocation4 + $0x2] }
 0x2d5   :  { %s870_s5 = vpop.sfrf %869 }
 0x2d6   :  { %p1000_p1 = scmp.ne.s32.totalorder %s870_s5, 0 }
 0x2d8   :  { %874 = shalt.err (%p1000_p1)  }
 0x2d9   :  { %876 = vsyncmov [#allocation4 + $0x3] }
 0x2dc   :  { %s877_s24 = vpop.sfrf %876 }
 0x2dd   :  { %p1001_p2 = scmp.ne.s32.totalorder %s877_s24, 0 }
 0x2df   :  { %881 = shalt.err (%p1001_p2)  }

</bundles_post_ra>
